<compile_context>
chip_gen: v7x
topology: tpu7x:2x2x1
jax: 0.10.0
libtpu: 0.0.40
codegen_flags: <defaults>
</compile_context>

<pallas_src>
import jax
import jax.numpy as jnp
from jax.experimental import pallas as pl
from jax.experimental.pallas import tpu as pltpu


def _round_up(x, m):
    return (x + m - 1) // m * m


# ---------------------------------------------------------------------------
# Pallas kernels
# ---------------------------------------------------------------------------
def _conv_relu_pool_kernel(w_ref, b_ref, p_ref, o_ref):
    """out^T tile = relu(max_q(W^T @ patches_q^T + b)) -- conv+bias+relu+2x2 pool."""
    w = w_ref[...]                     # (Cout_p, Kp)
    b = b_ref[...]                     # (Cout_p, 1) -> lane-broadcast
    res = None
    for q in range(4):                 # 4 pool-window offsets, unrolled
        acc = jnp.dot(w, p_ref[q], preferred_element_type=jnp.float32) + b
        res = acc if res is None else jnp.maximum(res, acc)
    o_ref[...] = jnp.maximum(res, 0.0)  # relu(max) == max(relu) (monotone)


def _fc_stack_kernel(x_ref, w1_ref, b1_ref, w2_ref, b2_ref, w3_ref, b3_ref, o_ref):
    """Fused fc1+ReLU -> fc2+ReLU -> fc3; intermediates never leave VMEM."""
    h = jnp.dot(x_ref[...], w1_ref[...], preferred_element_type=jnp.float32) + b1_ref[...]
    h = jnp.maximum(h, 0.0)
    h = jnp.dot(h, w2_ref[...], preferred_element_type=jnp.float32) + b2_ref[...]
    h = jnp.maximum(h, 0.0)
    o_ref[...] = jnp.dot(h, w3_ref[...], preferred_element_type=jnp.float32) + b3_ref[...]


# ---------------------------------------------------------------------------
# Wrappers
# ---------------------------------------------------------------------------
def conv_relu_pool(x_cnhw, wTp, bp, *, k, cout):
    """x: (Cin, N, H, W) -> (cout, N, (H-k+1)//2, (W-k+1)//2).

    wTp: pre-padded (cout_p, Kp) with K flattened as (cin, ki, kj).
    bp : pre-padded (cout_p, 1).
    """
    C, N, H, W = x_cnhw.shape
    OH2, OW2 = (H - k + 1) // 2, (W - k + 1) // 2
    M = N * OH2 * OW2
    K = C * k * k
    cout_p, Kp = wTp.shape

    TM = min(512, _round_up(M, 128))          # fixed, VMEM-safe spatial tile
    Mp = _round_up(M, TM)

    # 4 pool-offset im2col operands, K ordered (cin, ki, kj); glue in XLA.
    mats = []
    for pi in range(2):
        for pj in range(2):
            slabs = [x_cnhw[:, :, pi + ki::2, pj + kj::2][:, :, :OH2, :OW2]
                     for ki in range(k) for kj in range(k)]
            p = jnp.stack(slabs, axis=1).reshape(K, M)   # (C,k*k,N,OH2,OW2)->(K,M)
            mats.append(p)
    patches = jnp.stack(mats, axis=0)                    # (4, K, M)
    patches = jnp.pad(patches, ((0, 0), (0, Kp - K), (0, Mp - M)))

    flops = int(2 * 4 * cout_p * Kp * Mp)
    bytes_accessed = int(4 * (4 * Kp * Mp + cout_p * Kp + cout_p + cout_p * Mp))

    out = pl.pallas_call(
        _conv_relu_pool_kernel,
        out_shape=jax.ShapeDtypeStruct((cout_p, Mp), jnp.float32),
        grid=(Mp // TM,),
        in_specs=[
            pl.BlockSpec((cout_p, Kp), lambda m: (0, 0)),
            pl.BlockSpec((cout_p, 1), lambda m: (0, 0)),
            pl.BlockSpec((4, Kp, TM), lambda m: (0, 0, m)),
        ],
        out_specs=pl.BlockSpec((cout_p, TM), lambda m: (0, m)),
        compiler_params=pltpu.CompilerParams(
            dimension_semantics=("parallel",),
            vmem_limit_bytes=32 * 1024 * 1024,
        ),
        cost_estimate=pl.CostEstimate(flops=flops, transcendentals=0,
                                      bytes_accessed=bytes_accessed),
    )(wTp, bp, patches)
    return out[:cout, :M].reshape(cout, N, OH2, OW2)


def fc_stack(x, params):
    """x: (N, 400) -> (N, 6) through fused fc1/fc2/fc3 (+ReLU on fc1, fc2)."""
    N, D = x.shape                                  # D == 400
    TB = min(256, _round_up(N, 8))
    Bp = _round_up(N, TB)
    xp = jnp.pad(x, ((0, Bp - N), (0, 512 - D)))

    flops = int(2 * Bp * (512 * 128 + 128 * 128 + 128 * 128))
    bytes_accessed = int(4 * (Bp * 512 + 512 * 128 + 2 * 128 * 128 + 3 * 128 + Bp * 128))

    out = pl.pallas_call(
        _fc_stack_kernel,
        out_shape=jax.ShapeDtypeStruct((Bp, 128), jnp.float32),
        grid=(Bp // TB,),
        in_specs=[
            pl.BlockSpec((TB, 512), lambda i: (i, 0)),
            pl.BlockSpec((512, 128), lambda i: (0, 0)),
            pl.BlockSpec((1, 128), lambda i: (0, 0)),
            pl.BlockSpec((128, 128), lambda i: (0, 0)),
            pl.BlockSpec((1, 128), lambda i: (0, 0)),
            pl.BlockSpec((128, 128), lambda i: (0, 0)),
            pl.BlockSpec((1, 128), lambda i: (0, 0)),
        ],
        out_specs=pl.BlockSpec((TB, 128), lambda i: (i, 0)),
        compiler_params=pltpu.CompilerParams(
            dimension_semantics=("parallel",),
            vmem_limit_bytes=32 * 1024 * 1024,
        ),
        cost_estimate=pl.CostEstimate(flops=flops, transcendentals=0,
                                      bytes_accessed=bytes_accessed),
    )(xp, params["fc1_w"], params["fc1_b"], params["fc2_w"], params["fc2_b"],
      params["fc3_w"], params["fc3_b"])
    return out[:N, :6]


# ---------------------------------------------------------------------------
# Parameter init: PyTorch-style uniform(-1/sqrt(fan_in), +), pre-padded ONCE
# into the exact layouts the kernels consume (no per-forward pad/copy).
# ---------------------------------------------------------------------------
def init_params(key):
    def uniform(k, shape, fan_in):
        bound = 1.0 / (fan_in ** 0.5)
        return jax.random.uniform(k, shape, jnp.float32, -bound, bound)

    keys = jax.random.split(key, 10)
    p = {}
    # conv1: torch (6,3,5,5) -> W^T (6,75) -> padded (8, 80); K order (cin,ki,kj)
    w1 = uniform(keys[0], (6, 3, 5, 5), 75).reshape(6, 75)
    p["w1"] = jnp.pad(w1, ((0, 2), (0, 5)))
    p["b1"] = jnp.pad(uniform(keys[1], (6,), 75).reshape(6, 1), ((0, 2), (0, 0)))
    # conv2: torch (16,6,5,5) -> (16,150) -> padded (16, 152)
    w2 = uniform(keys[2], (16, 6, 5, 5), 150).reshape(16, 150)
    p["w2"] = jnp.pad(w2, ((0, 0), (0, 2)))
    p["b2"] = uniform(keys[3], (16,), 150).reshape(16, 1)
    # fc layers stored as (in, out), pre-padded to MXU-friendly shapes
    p["fc1_w"] = jnp.pad(uniform(keys[4], (400, 120), 400), ((0, 112), (0, 8)))
    p["fc1_b"] = jnp.pad(uniform(keys[5], (120,), 400).reshape(1, 120), ((0, 0), (0, 8)))
    p["fc2_w"] = jnp.pad(uniform(keys[6], (120, 84), 120), ((0, 8), (0, 44)))
    p["fc2_b"] = jnp.pad(uniform(keys[7], (84,), 120).reshape(1, 84), ((0, 0), (0, 44)))
    p["fc3_w"] = jnp.pad(uniform(keys[8], (84, 6), 84), ((0, 44), (0, 122)))
    p["fc3_b"] = jnp.pad(uniform(keys[9], (6,), 84).reshape(1, 6), ((0, 0), (0, 122)))
    return p


# ---------------------------------------------------------------------------
# Forward pass (matches torch Net.forward semantics)
# ---------------------------------------------------------------------------
def net_forward(x_nchw, params):
    N = x_nchw.shape[0]
    x = jnp.transpose(x_nchw, (1, 0, 2, 3))                    # (3, N, 32, 32)

    y = conv_relu_pool(x, params["w1"], params["b1"], k=5, cout=6)    # (6, N, 14, 14)
    y = conv_relu_pool(y, params["w2"], params["b2"], k=5, cout=16)   # (16, N, 5, 5)

    # flatten in PyTorch (C, H, W) order: x.view(-1, 16*5*5)
    feats = jnp.transpose(y, (1, 0, 2, 3)).reshape(N, 16 * 5 * 5)
    return fc_stack(feats, params)                             # (N, 6)


if __name__ == "__main__":
    key = jax.random.PRNGKey(0)
    key_x, key_p = jax.random.split(key)

    # Input must be 32x32 so the flatten yields 16*5*5 = 400.
    x = jax.random.normal(key_x, (2, 3, 32, 32), jnp.float32)
    params = init_params(key_p)

    fwd = jax.jit(net_forward)
    out = fwd(x, params)
    out = jax.block_until_ready(out)
    assert out.shape == (2, 6), out.shape
    print("KERNEL_OK")
</pallas_src>

<mosaic_0001>
module attributes {stable_mosaic.version = 11 : i64} {
  func.func @_conv_relu_pool_kernel(%arg0: i32, %arg1: memref<8x80xf32, #tpu.memory_space<vmem>>, %arg2: memref<8x1xf32, #tpu.memory_space<vmem>>, %arg3: memref<4x80x512xf32, #tpu.memory_space<vmem>>, %arg4: memref<8x512xf32, #tpu.memory_space<vmem>>) attributes {dimension_semantics = [#tpu.dimension_semantics<parallel>], iteration_bounds = array<i64: 1>, scalar_prefetch = 0 : i64, scratch_operands = 0 : i64, tpu.core_type = #tpu.core_type<tc>, window_params = [{pipeline_mode = #tpu.pipeline_mode<synchronous>, transform_indices = @transform_0, window_bounds = array<i64: 8, 80>}, {pipeline_mode = #tpu.pipeline_mode<synchronous>, transform_indices = @transform_1, window_bounds = array<i64: 8, 1>}, {transform_indices = @transform_2, window_bounds = array<i64: 4, 80, 512>}, {transform_indices = @transform_3, window_bounds = array<i64: 8, 512>}]} {
    %c0 = arith.constant 0 : index
    %c0_0 = arith.constant 0 : index
    %0 = vector.load %arg1[%c0, %c0_0] : memref<8x80xf32, #tpu.memory_space<vmem>>, vector<8x80xf32>
    %c0_1 = arith.constant 0 : index
    %c0_2 = arith.constant 0 : index
    %1 = vector.load %arg2[%c0_1, %c0_2] : memref<8x1xf32, #tpu.memory_space<vmem>>, vector<8x1xf32>
    %c0_3 = arith.constant 0 : index
    %c0_4 = arith.constant 0 : index
    %c0_5 = arith.constant 0 : index
    %2 = vector.load %arg3[%c0_3, %c0_4, %c0_5] : memref<4x80x512xf32, #tpu.memory_space<vmem>>, vector<1x80x512xf32>
    %3 = vector.shape_cast %2 : vector<1x80x512xf32> to vector<80x512xf32>
    %cst = arith.constant dense<0.000000e+00> : vector<8x512xf32>
    %4 = tpu.matmul %0, %3, %cst {dimension_numbers = #tpu.dot_dimension_numbers<[1], [0], [0], [1], [0, 0, 1, 1], [], []>} : vector<8x80xf32>, vector<80x512xf32>, vector<8x512xf32> -> vector<8x512xf32>
    %5 = vector.broadcast %1 : vector<8x1xf32> to vector<8x512xf32>
    %6 = arith.addf %4, %5 : vector<8x512xf32>
    %c1 = arith.constant 1 : index
    %c0_6 = arith.constant 0 : index
    %c0_7 = arith.constant 0 : index
    %7 = vector.load %arg3[%c1, %c0_6, %c0_7] : memref<4x80x512xf32, #tpu.memory_space<vmem>>, vector<1x80x512xf32>
    %8 = vector.shape_cast %7 : vector<1x80x512xf32> to vector<80x512xf32>
    %cst_8 = arith.constant dense<0.000000e+00> : vector<8x512xf32>
    %9 = tpu.matmul %0, %8, %cst_8 {dimension_numbers = #tpu.dot_dimension_numbers<[1], [0], [0], [1], [0, 0, 1, 1], [], []>} : vector<8x80xf32>, vector<80x512xf32>, vector<8x512xf32> -> vector<8x512xf32>
    %10 = vector.broadcast %1 : vector<8x1xf32> to vector<8x512xf32>
    %11 = arith.addf %9, %10 : vector<8x512xf32>
    %12 = arith.maximumf %6, %11 : vector<8x512xf32>
    %c2 = arith.constant 2 : index
    %c0_9 = arith.constant 0 : index
    %c0_10 = arith.constant 0 : index
    %13 = vector.load %arg3[%c2, %c0_9, %c0_10] : memref<4x80x512xf32, #tpu.memory_space<vmem>>, vector<1x80x512xf32>
    %14 = vector.shape_cast %13 : vector<1x80x512xf32> to vector<80x512xf32>
    %cst_11 = arith.constant dense<0.000000e+00> : vector<8x512xf32>
    %15 = tpu.matmul %0, %14, %cst_11 {dimension_numbers = #tpu.dot_dimension_numbers<[1], [0], [0], [1], [0, 0, 1, 1], [], []>} : vector<8x80xf32>, vector<80x512xf32>, vector<8x512xf32> -> vector<8x512xf32>
    %16 = vector.broadcast %1 : vector<8x1xf32> to vector<8x512xf32>
    %17 = arith.addf %15, %16 : vector<8x512xf32>
    %18 = arith.maximumf %12, %17 : vector<8x512xf32>
    %c3 = arith.constant 3 : index
    %c0_12 = arith.constant 0 : index
    %c0_13 = arith.constant 0 : index
    %19 = vector.load %arg3[%c3, %c0_12, %c0_13] : memref<4x80x512xf32, #tpu.memory_space<vmem>>, vector<1x80x512xf32>
    %20 = vector.shape_cast %19 : vector<1x80x512xf32> to vector<80x512xf32>
    %cst_14 = arith.constant dense<0.000000e+00> : vector<8x512xf32>
    %21 = tpu.matmul %0, %20, %cst_14 {dimension_numbers = #tpu.dot_dimension_numbers<[1], [0], [0], [1], [0, 0, 1, 1], [], []>} : vector<8x80xf32>, vector<80x512xf32>, vector<8x512xf32> -> vector<8x512xf32>
    %22 = vector.broadcast %1 : vector<8x1xf32> to vector<8x512xf32>
    %23 = arith.addf %21, %22 : vector<8x512xf32>
    %24 = arith.maximumf %18, %23 : vector<8x512xf32>
    %cst_15 = arith.constant 0.000000e+00 : f32
    %25 = vector.broadcast %cst_15 : f32 to vector<8x512xf32>
    %26 = arith.maximumf %24, %25 : vector<8x512xf32>
    %c0_16 = arith.constant 0 : index
    %c0_17 = arith.constant 0 : index
    %27 = vector.load %arg4[%c0_16, %c0_17] : memref<8x512xf32, #tpu.memory_space<vmem>>, vector<8x512xf32>
    tpu.vector_store %arg4[%c0_16, %c0_17], %26 {strides = array<i32>} : memref<8x512xf32, #tpu.memory_space<vmem>>, vector<8x512xf32>,
    return
  }
  func.func @transform_0(%arg0: i32) -> (i32, i32) {
    %c0_i32 = arith.constant 0 : i32
    %c0_i32_0 = arith.constant 0 : i32
    %c0_i32_1 = arith.constant 0 : i32
    return %c0_i32, %c0_i32_0 : i32, i32
  }
  func.func @transform_1(%arg0: i32) -> (i32, i32) {
    %c0_i32 = arith.constant 0 : i32
    %c0_i32_0 = arith.constant 0 : i32
    %c0_i32_1 = arith.constant 0 : i32
    return %c0_i32, %c0_i32_0 : i32, i32
  }
  func.func @transform_2(%arg0: i32) -> (i32, i32, i32) {
    %c0_i32 = arith.constant 0 : i32
    %c0_i32_0 = arith.constant 0 : i32
    %c0_i32_1 = arith.constant 0 : i32
    return %c0_i32, %c0_i32_0, %arg0 : i32, i32, i32
  }
  func.func @transform_3(%arg0: i32) -> (i32, i32) {
    %c0_i32 = arith.constant 0 : i32
    %c0_i32_0 = arith.constant 0 : i32
    return %c0_i32, %arg0 : i32, i32
  }
}

module attributes {stable_mosaic.version = 11 : i64} {
  func.func @_conv_relu_pool_kernel(%arg0: i32, %arg1: memref<16x152xf32, #tpu.memory_space<vmem>>, %arg2: memref<16x1xf32, #tpu.memory_space<vmem>>, %arg3: memref<4x152x128xf32, #tpu.memory_space<vmem>>, %arg4: memref<16x128xf32, #tpu.memory_space<vmem>>) attributes {dimension_semantics = [#tpu.dimension_semantics<parallel>], iteration_bounds = array<i64: 1>, scalar_prefetch = 0 : i64, scratch_operands = 0 : i64, tpu.core_type = #tpu.core_type<tc>, window_params = [{pipeline_mode = #tpu.pipeline_mode<synchronous>, transform_indices = @transform_0, window_bounds = array<i64: 16, 152>}, {pipeline_mode = #tpu.pipeline_mode<synchronous>, transform_indices = @transform_1, window_bounds = array<i64: 16, 1>}, {transform_indices = @transform_2, window_bounds = array<i64: 4, 152, 128>}, {transform_indices = @transform_3, window_bounds = array<i64: 16, 128>}]} {
    %c0 = arith.constant 0 : index
    %c0_0 = arith.constant 0 : index
    %0 = vector.load %arg1[%c0, %c0_0] : memref<16x152xf32, #tpu.memory_space<vmem>>, vector<16x152xf32>
    %c0_1 = arith.constant 0 : index
    %c0_2 = arith.constant 0 : index
    %1 = vector.load %arg2[%c0_1, %c0_2] : memref<16x1xf32, #tpu.memory_space<vmem>>, vector<16x1xf32>
    %c0_3 = arith.constant 0 : index
    %c0_4 = arith.constant 0 : index
    %c0_5 = arith.constant 0 : index
    %2 = vector.load %arg3[%c0_3, %c0_4, %c0_5] : memref<4x152x128xf32, #tpu.memory_space<vmem>>, vector<1x152x128xf32>
    %3 = vector.shape_cast %2 : vector<1x152x128xf32> to vector<152x128xf32>
    %cst = arith.constant dense<0.000000e+00> : vector<16x128xf32>
    %4 = tpu.matmul %0, %3, %cst {dimension_numbers = #tpu.dot_dimension_numbers<[1], [0], [0], [1], [0, 0, 1, 1], [], []>} : vector<16x152xf32>, vector<152x128xf32>, vector<16x128xf32> -> vector<16x128xf32>
    %5 = vector.broadcast %1 : vector<16x1xf32> to vector<16x128xf32>
    %6 = arith.addf %4, %5 : vector<16x128xf32>
    %c1 = arith.constant 1 : index
    %c0_6 = arith.constant 0 : index
    %c0_7 = arith.constant 0 : index
    %7 = vector.load %arg3[%c1, %c0_6, %c0_7] : memref<4x152x128xf32, #tpu.memory_space<vmem>>, vector<1x152x128xf32>
    %8 = vector.shape_cast %7 : vector<1x152x128xf32> to vector<152x128xf32>
    %cst_8 = arith.constant dense<0.000000e+00> : vector<16x128xf32>
    %9 = tpu.matmul %0, %8, %cst_8 {dimension_numbers = #tpu.dot_dimension_numbers<[1], [0], [0], [1], [0, 0, 1, 1], [], []>} : vector<16x152xf32>, vector<152x128xf32>, vector<16x128xf32> -> vector<16x128xf32>
    %10 = vector.broadcast %1 : vector<16x1xf32> to vector<16x128xf32>
    %11 = arith.addf %9, %10 : vector<16x128xf32>
    %12 = arith.maximumf %6, %11 : vector<16x128xf32>
    %c2 = arith.constant 2 : index
    %c0_9 = arith.constant 0 : index
    %c0_10 = arith.constant 0 : index
    %13 = vector.load %arg3[%c2, %c0_9, %c0_10] : memref<4x152x128xf32, #tpu.memory_space<vmem>>, vector<1x152x128xf32>
    %14 = vector.shape_cast %13 : vector<1x152x128xf32> to vector<152x128xf32>
    %cst_11 = arith.constant dense<0.000000e+00> : vector<16x128xf32>
    %15 = tpu.matmul %0, %14, %cst_11 {dimension_numbers = #tpu.dot_dimension_numbers<[1], [0], [0], [1], [0, 0, 1, 1], [], []>} : vector<16x152xf32>, vector<152x128xf32>, vector<16x128xf32> -> vector<16x128xf32>
    %16 = vector.broadcast %1 : vector<16x1xf32> to vector<16x128xf32>
    %17 = arith.addf %15, %16 : vector<16x128xf32>
    %18 = arith.maximumf %12, %17 : vector<16x128xf32>
    %c3 = arith.constant 3 : index
    %c0_12 = arith.constant 0 : index
    %c0_13 = arith.constant 0 : index
    %19 = vector.load %arg3[%c3, %c0_12, %c0_13] : memref<4x152x128xf32, #tpu.memory_space<vmem>>, vector<1x152x128xf32>
    %20 = vector.shape_cast %19 : vector<1x152x128xf32> to vector<152x128xf32>
    %cst_14 = arith.constant dense<0.000000e+00> : vector<16x128xf32>
    %21 = tpu.matmul %0, %20, %cst_14 {dimension_numbers = #tpu.dot_dimension_numbers<[1], [0], [0], [1], [0, 0, 1, 1], [], []>} : vector<16x152xf32>, vector<152x128xf32>, vector<16x128xf32> -> vector<16x128xf32>
    %22 = vector.broadcast %1 : vector<16x1xf32> to vector<16x128xf32>
    %23 = arith.addf %21, %22 : vector<16x128xf32>
    %24 = arith.maximumf %18, %23 : vector<16x128xf32>
    %cst_15 = arith.constant 0.000000e+00 : f32
    %25 = vector.broadcast %cst_15 : f32 to vector<16x128xf32>
    %26 = arith.maximumf %24, %25 : vector<16x128xf32>
    %c0_16 = arith.constant 0 : index
    %c0_17 = arith.constant 0 : index
    %27 = vector.load %arg4[%c0_16, %c0_17] : memref<16x128xf32, #tpu.memory_space<vmem>>, vector<16x128xf32>
    tpu.vector_store %arg4[%c0_16, %c0_17], %26 {strides = array<i32>} : memref<16x128xf32, #tpu.memory_space<vmem>>, vector<16x128xf32>,
    return
  }
  func.func @transform_0(%arg0: i32) -> (i32, i32) {
    %c0_i32 = arith.constant 0 : i32
    %c0_i32_0 = arith.constant 0 : i32
    %c0_i32_1 = arith.constant 0 : i32
    return %c0_i32, %c0_i32_0 : i32, i32
  }
  func.func @transform_1(%arg0: i32) -> (i32, i32) {
    %c0_i32 = arith.constant 0 : i32
    %c0_i32_0 = arith.constant 0 : i32
    %c0_i32_1 = arith.constant 0 : i32
    return %c0_i32, %c0_i32_0 : i32, i32
  }
  func.func @transform_2(%arg0: i32) -> (i32, i32, i32) {
    %c0_i32 = arith.constant 0 : i32
    %c0_i32_0 = arith.constant 0 : i32
    %c0_i32_1 = arith.constant 0 : i32
    return %c0_i32, %c0_i32_0, %arg0 : i32, i32, i32
  }
  func.func @transform_3(%arg0: i32) -> (i32, i32) {
    %c0_i32 = arith.constant 0 : i32
    %c0_i32_0 = arith.constant 0 : i32
    return %c0_i32, %arg0 : i32, i32
  }
}

module attributes {stable_mosaic.version = 11 : i64} {
  func.func @_fc_stack_kernel(%arg0: i32, %arg1: memref<8x512xf32, #tpu.memory_space<vmem>>, %arg2: memref<512x128xf32, #tpu.memory_space<vmem>>, %arg3: memref<1x128xf32, #tpu.memory_space<vmem>>, %arg4: memref<128x128xf32, #tpu.memory_space<vmem>>, %arg5: memref<1x128xf32, #tpu.memory_space<vmem>>, %arg6: memref<128x128xf32, #tpu.memory_space<vmem>>, %arg7: memref<1x128xf32, #tpu.memory_space<vmem>>, %arg8: memref<8x128xf32, #tpu.memory_space<vmem>>) attributes {dimension_semantics = [#tpu.dimension_semantics<parallel>], iteration_bounds = array<i64: 1>, scalar_prefetch = 0 : i64, scratch_operands = 0 : i64, tpu.core_type = #tpu.core_type<tc>, window_params = [{transform_indices = @transform_0, window_bounds = array<i64: 8, 512>}, {pipeline_mode = #tpu.pipeline_mode<synchronous>, transform_indices = @transform_1, window_bounds = array<i64: 512, 128>}, {pipeline_mode = #tpu.pipeline_mode<synchronous>, transform_indices = @transform_2, window_bounds = array<i64: 1, 128>}, {pipeline_mode = #tpu.pipeline_mode<synchronous>, transform_indices = @transform_3, window_bounds = array<i64: 128, 128>}, {pipeline_mode = #tpu.pipeline_mode<synchronous>, transform_indices = @transform_4, window_bounds = array<i64: 1, 128>}, {pipeline_mode = #tpu.pipeline_mode<synchronous>, transform_indices = @transform_5, window_bounds = array<i64: 128, 128>}, {pipeline_mode = #tpu.pipeline_mode<synchronous>, transform_indices = @transform_6, window_bounds = array<i64: 1, 128>}, {transform_indices = @transform_7, window_bounds = array<i64: 8, 128>}]} {
    %c0 = arith.constant 0 : index
    %c0_0 = arith.constant 0 : index
    %0 = vector.load %arg1[%c0, %c0_0] : memref<8x512xf32, #tpu.memory_space<vmem>>, vector<8x512xf32>
    %c0_1 = arith.constant 0 : index
    %c0_2 = arith.constant 0 : index
    %1 = vector.load %arg2[%c0_1, %c0_2] : memref<512x128xf32, #tpu.memory_space<vmem>>, vector<512x128xf32>
    %cst = arith.constant dense<0.000000e+00> : vector<8x128xf32>
    %2 = tpu.matmul %0, %1, %cst {dimension_numbers = #tpu.dot_dimension_numbers<[1], [0], [0], [1], [0, 0, 1, 1], [], []>} : vector<8x512xf32>, vector<512x128xf32>, vector<8x128xf32> -> vector<8x128xf32>
    %c0_3 = arith.constant 0 : index
    %c0_4 = arith.constant 0 : index
    %3 = vector.load %arg3[%c0_3, %c0_4] : memref<1x128xf32, #tpu.memory_space<vmem>>, vector<1x128xf32>
    %4 = vector.broadcast %3 : vector<1x128xf32> to vector<8x128xf32>
    %5 = arith.addf %2, %4 : vector<8x128xf32>
    %cst_5 = arith.constant 0.000000e+00 : f32
    %6 = vector.broadcast %cst_5 : f32 to vector<8x128xf32>
    %7 = arith.maximumf %5, %6 : vector<8x128xf32>
    %c0_6 = arith.constant 0 : index
    %c0_7 = arith.constant 0 : index
    %8 = vector.load %arg4[%c0_6, %c0_7] : memref<128x128xf32, #tpu.memory_space<vmem>>, vector<128x128xf32>
    %cst_8 = arith.constant dense<0.000000e+00> : vector<8x128xf32>
    %9 = tpu.matmul %7, %8, %cst_8 {dimension_numbers = #tpu.dot_dimension_numbers<[1], [0], [0], [1], [0, 0, 1, 1], [], []>} : vector<8x128xf32>, vector<128x128xf32>, vector<8x128xf32> -> vector<8x128xf32>
    %c0_9 = arith.constant 0 : index
    %c0_10 = arith.constant 0 : index
    %10 = vector.load %arg5[%c0_9, %c0_10] : memref<1x128xf32, #tpu.memory_space<vmem>>, vector<1x128xf32>
    %11 = vector.broadcast %10 : vector<1x128xf32> to vector<8x128xf32>
    %12 = arith.addf %9, %11 : vector<8x128xf32>
    %cst_11 = arith.constant 0.000000e+00 : f32
    %13 = vector.broadcast %cst_11 : f32 to vector<8x128xf32>
    %14 = arith.maximumf %12, %13 : vector<8x128xf32>
    %c0_12 = arith.constant 0 : index
    %c0_13 = arith.constant 0 : index
    %15 = vector.load %arg6[%c0_12, %c0_13] : memref<128x128xf32, #tpu.memory_space<vmem>>, vector<128x128xf32>
    %cst_14 = arith.constant dense<0.000000e+00> : vector<8x128xf32>
    %16 = tpu.matmul %14, %15, %cst_14 {dimension_numbers = #tpu.dot_dimension_numbers<[1], [0], [0], [1], [0, 0, 1, 1], [], []>} : vector<8x128xf32>, vector<128x128xf32>, vector<8x128xf32> -> vector<8x128xf32>
    %c0_15 = arith.constant 0 : index
    %c0_16 = arith.constant 0 : index
    %17 = vector.load %arg7[%c0_15, %c0_16] : memref<1x128xf32, #tpu.memory_space<vmem>>, vector<1x128xf32>
    %18 = vector.broadcast %17 : vector<1x128xf32> to vector<8x128xf32>
    %19 = arith.addf %16, %18 : vector<8x128xf32>
    %c0_17 = arith.constant 0 : index
    %c0_18 = arith.constant 0 : index
    %20 = vector.load %arg8[%c0_17, %c0_18] : memref<8x128xf32, #tpu.memory_space<vmem>>, vector<8x128xf32>
    tpu.vector_store %arg8[%c0_17, %c0_18], %19 {strides = array<i32>} : memref<8x128xf32, #tpu.memory_space<vmem>>, vector<8x128xf32>,
    return
  }
  func.func @transform_0(%arg0: i32) -> (i32, i32) {
    %c0_i32 = arith.constant 0 : i32
    %c0_i32_0 = arith.constant 0 : i32
    return %arg0, %c0_i32 : i32, i32
  }
  func.func @transform_1(%arg0: i32) -> (i32, i32) {
    %c0_i32 = arith.constant 0 : i32
    %c0_i32_0 = arith.constant 0 : i32
    %c0_i32_1 = arith.constant 0 : i32
    return %c0_i32, %c0_i32_0 : i32, i32
  }
  func.func @transform_2(%arg0: i32) -> (i32, i32) {
    %c0_i32 = arith.constant 0 : i32
    %c0_i32_0 = arith.constant 0 : i32
    %c0_i32_1 = arith.constant 0 : i32
    return %c0_i32, %c0_i32_0 : i32, i32
  }
  func.func @transform_3(%arg0: i32) -> (i32, i32) {
    %c0_i32 = arith.constant 0 : i32
    %c0_i32_0 = arith.constant 0 : i32
    %c0_i32_1 = arith.constant 0 : i32
    return %c0_i32, %c0_i32_0 : i32, i32
  }
  func.func @transform_4(%arg0: i32) -> (i32, i32) {
    %c0_i32 = arith.constant 0 : i32
    %c0_i32_0 = arith.constant 0 : i32
    %c0_i32_1 = arith.constant 0 : i32
    return %c0_i32, %c0_i32_0 : i32, i32
  }
  func.func @transform_5(%arg0: i32) -> (i32, i32) {
    %c0_i32 = arith.constant 0 : i32
    %c0_i32_0 = arith.constant 0 : i32
    %c0_i32_1 = arith.constant 0 : i32
    return %c0_i32, %c0_i32_0 : i32, i32
  }
  func.func @transform_6(%arg0: i32) -> (i32, i32) {
    %c0_i32 = arith.constant 0 : i32
    %c0_i32_0 = arith.constant 0 : i32
    %c0_i32_1 = arith.constant 0 : i32
    return %c0_i32, %c0_i32_0 : i32, i32
  }
  func.func @transform_7(%arg0: i32) -> (i32, i32) {
    %c0_i32 = arith.constant 0 : i32
    %c0_i32_0 = arith.constant 0 : i32
    return %arg0, %c0_i32 : i32, i32
  }
}

</mosaic_0001>

<bundles_post_ra>
// kernel: net_forward.3
= control target key start
LH: loop header
LB: loop body
LE: loop exit
PB: predicated region body
PF: predicated region fallthrough
CT: control target
= control target key end

     0   :  { %v1071_v3 = vmov 0.0   ;;  %v1072_v8 = vmov 0   ;;  %vm61_vm0 = vcmask 654336   ;;  %s1617_s2 = inlined_call_operand.vmem [shape: f32[4,80,512], index: 2, kind: input, shape index: {}]   ;;  %s1618_s0 = inlined_call_operand.vmem [shape: f32[8,80], index: 0, kind: input, shape index: {}]   ;;  %s1619_s1 = inlined_call_operand.vmem [shape: f32[8,1], index: 1, kind: input, shape index: {}]   ;;  %s1620_s3 = inlined_call_operand.vmem [shape: f32[8,512], index: 3, kind: output, shape index: {}]  }
   0x1   :  { %v17_v0 = vld [vmem:[%s1617_s2 + $0x8] sm:$0xff]  ;;  %v19_v2 = vld [vmem:[%s1617_s2 + $0x18] sm:$0xff]  ;;  %129 = vmatprep.mubr.f32.mxu0 %v1071_v3  ;;  %200 = vmatprep.mubr.f32.mxu1 %v1071_v3  ;;  %v16_v6 = vld [vmem:[%s1617_s2] sm:$0xff] }
   0x2   :  { %v21_v1 = vld [vmem:[%s1617_s2 + $0x28] sm:$0xff]  ;;  %v23_v5 = vld [vmem:[%s1617_s2 + $0x38] sm:$0xff]  ;;  %v20_v7 = vld [vmem:[%s1617_s2 + $0x20] sm:$0xff]  ;;  %1070 = vset.pattern.permute.xlu0 %v1072_v8 }
   0x3   :  { %v908_v4 = vpack.c.bf16 %v21_v1, %v17_v0  ;;  %v928_v9 = vpack.c.bf16 %v23_v5, %v19_v2  ;;  %v910_v10 = vpack.c.bf16 %v20_v7, %v16_v6  ;;  %v18_v11 = vld [vmem:[%s1617_s2 + $0x10] sm:$0xff]  ;;  %v25_v13 = vld [vmem:[%s1617_s2 + $0x48] sm:$0xff]  ;;  %v27_v16 = vld [vmem:[%s1617_s2 + $0x58] sm:$0xff] }
   0x4   :  { %v22_v12 = vld [vmem:[%s1617_s2 + $0x30] sm:$0xff]  ;;  %v29_v15 = vld [vmem:[%s1617_s2 + $0x68] sm:$0xff]  ;;  %v31_v17 = vld [vmem:[%s1617_s2 + $0x78] sm:$0xff] }
   0x5   :  { %909 = vmatprep.subr.bf16.mxu0 %v908_v4  ;;  %v930_v14 = vpack.c.bf16 %v22_v12, %v18_v11  ;;  %929 = vmatprep.subr.bf16.mxu1 %v928_v9  ;;  %v912_v18 = vpack.c.bf16 %v29_v15, %v25_v13  ;;  %v932_v19 = vpack.c.bf16 %v31_v17, %v27_v16  ;;  %v24_v20 = vld [vmem:[%s1617_s2 + $0x40] sm:$0xff]  ;;  %v26_v22 = vld [vmem:[%s1617_s2 + $0x50] sm:$0xff]  ;;  %v33_v25 = vld [vmem:[%s1617_s2 + $0x88] sm:$0xff] }
   0x6   :  { %911 = vmatpush1.bf16.msra.mxu0 %v910_v10  ;;  %v28_v21 = vld [vmem:[%s1617_s2 + $0x60] sm:$0xff]  ;;  %v30_v24 = vld [vmem:[%s1617_s2 + $0x70] sm:$0xff]  ;;  %v37_v26 = vld [vmem:[%s1617_s2 + $0xa8] sm:$0xff] }
   0x7   :  { %931 = vmatpush1.bf16.msra.mxu1 %v930_v14  ;;  %v914_v23 = vpack.c.bf16 %v28_v21, %v24_v20  ;;  %913 = vmatprep.subr.bf16.mxu0 %v912_v18  ;;  %v934_v27 = vpack.c.bf16 %v30_v24, %v26_v22  ;;  %v916_v28 = vpack.c.bf16 %v37_v26, %v33_v25  ;;  %v35_v29 = vld [vmem:[%s1617_s2 + $0x98] sm:$0xff]  ;;  %v32_v31 = vld [vmem:[%s1617_s2 + $0x80] sm:$0xff]  ;;  %v34_v34 = vld [vmem:[%s1617_s2 + $0x90] sm:$0xff] }
   0x8   :  { %933 = vmatprep.subr.bf16.mxu1 %v932_v19  ;;  %v39_v30 = vld [vmem:[%s1617_s2 + $0xb8] sm:$0xff]  ;;  %v36_v33 = vld [vmem:[%s1617_s2 + $0xa0] sm:$0xff]  ;;  %v38_v35 = vld [vmem:[%s1617_s2 + $0xb0] sm:$0xff] }
   0x9   :  { %v936_v32 = vpack.c.bf16 %v39_v30, %v35_v29  ;;  %v918_v36 = vpack.c.bf16 %v36_v33, %v32_v31  ;;  %v41_v37 = vld [vmem:[%s1617_s2 + $0xc8] sm:$0xff]  ;;  %v43_v39 = vld [vmem:[%s1617_s2 + $0xd8] sm:$0xff]  ;;  %v938_v40 = vpack.c.bf16 %v38_v35, %v34_v34  ;;  %v40_v43 = vld [vmem:[%s1617_s2 + $0xc0] sm:$0xff] }
   0xa   :  { %915 = vmatpush1.bf16.msra.mxu0 %v914_v23  ;;  %v45_v38 = vld [vmem:[%s1617_s2 + $0xe8] sm:$0xff]  ;;  %v47_v42 = vld [vmem:[%s1617_s2 + $0xf8] sm:$0xff]  ;;  %v44_v44 = vld [vmem:[%s1617_s2 + $0xe0] sm:$0xff] }
   0xb   :  { %935 = vmatpush1.bf16.msra.mxu1 %v934_v27  ;;  %917 = vmatprep.subr.bf16.mxu0 %v916_v28  ;;  %v920_v41 = vpack.c.bf16 %v45_v38, %v41_v37  ;;  %v940_v45 = vpack.c.bf16 %v47_v42, %v43_v39  ;;  %v42_v46 = vld [vmem:[%s1617_s2 + $0xd0] sm:$0xff]  ;;  %v49_v48 = vld [vmem:[%s1617_s2 + $0x108] sm:$0xff]  ;;  %v51_v50 = vld [vmem:[%s1617_s2 + $0x118] sm:$0xff]  ;;  %v922_v52 = vpack.c.bf16 %v44_v44, %v40_v43 }
   0xc   :  { %937 = vmatprep.subr.bf16.mxu1 %v936_v32  ;;  %v46_v47 = vld [vmem:[%s1617_s2 + $0xf0] sm:$0xff]  ;;  %v53_v49 = vld [vmem:[%s1617_s2 + $0x128] sm:$0xff]  ;;  %v55_v51 = vld [vmem:[%s1617_s2 + $0x138] sm:$0xff] }
   0xd   :  { %v942_v53 = vpack.c.bf16 %v46_v47, %v42_v46  ;;  %v924_v54 = vpack.c.bf16 %v53_v49, %v49_v48  ;;  %v48_v55 = vld [vmem:[%s1617_s2 + $0x100] sm:$0xff]  ;;  %v50_v57 = vld [vmem:[%s1617_s2 + $0x110] sm:$0xff]  ;;  %v944_v58 = vpack.c.bf16 %v55_v51, %v51_v50  ;;  %v783_v60 = vld [vmem:[%s1617_s2 + $0x148] sm:$0xff] }
   0xe   :  { %919 = vmatpush1.bf16.msra.mxu0 %v918_v36  ;;  %v52_v56 = vld [vmem:[%s1617_s2 + $0x120] sm:$0xff]  ;;  %v54_v59 = vld [vmem:[%s1617_s2 + $0x130] sm:$0xff]  ;;  %v787_v61 = vld [vmem:[%s1617_s2 + $0x168] sm:$0xff] }
   0xf   :  { %939 = vmatpush1.bf16.msra.mxu1 %v938_v40  ;;  %921 = vmatprep.subr.bf16.mxu0 %v920_v41  ;;  %v785_v62 = vld [vmem:[%s1617_s2 + $0x158] sm:$0xff]  ;;  %v926_v0 = vpack.c.bf16 %v52_v56, %v48_v55  ;;  %v946_v1 = vpack.c.bf16 %v54_v59, %v50_v57  ;;  %v948_v2 = vpack.c.bf16 %v787_v61, %v783_v60  ;;  %v782_v4 = vld [vmem:[%s1617_s2 + $0x140] sm:$0xff]  ;;  %v784_v6 = vld [vmem:[%s1617_s2 + $0x150] sm:$0xff] }
  0x10   :  { %941 = vmatprep.subr.bf16.mxu1 %v940_v45  ;;  %v789_v63 = vld [vmem:[%s1617_s2 + $0x178] sm:$0xff]  ;;  %v786_v5 = vld [vmem:[%s1617_s2 + $0x160] sm:$0xff]  ;;  %v788_v8 = vld [vmem:[%s1617_s2 + $0x170] sm:$0xff] }
  0x11   :  { %v968_v7 = vpack.c.bf16 %v789_v63, %v785_v62  ;;  %v791_v9 = vld [vmem:[%s1617_s2 + $0x188] sm:$0xff]  ;;  %v793_v11 = vld [vmem:[%s1617_s2 + $0x198] sm:$0xff]  ;;  %v1254_v13 = vld [vmem:[%s1618_s0] sm:$0xff]  ;;  %v950_v14 = vpack.c.bf16 %v786_v5, %v782_v4  ;;  %v970_v15 = vpack.c.bf16 %v788_v8, %v784_v6 }
  0x12   :  { %923 = vmatpush1.bf16.msra.mxu0 %v922_v52  ;;  %v795_v10 = vld [vmem:[%s1617_s2 + $0x1a8] sm:$0xff]  ;;  %v797_v12 = vld [vmem:[%s1617_s2 + $0x1b8] sm:$0xff]  ;;  %v790_v17 = vld [vmem:[%s1617_s2 + $0x180] sm:$0xff] }
  0x13   :  { %943 = vmatpush1.bf16.msra.mxu1 %v942_v53  ;;  %925 = vmatprep.subr.bf16.mxu0 %v924_v54  ;;  %v952_v16 = vpack.c.bf16 %v795_v10, %v791_v9  ;;  %v794_v18 = vld [vmem:[%s1617_s2 + $0x1a0] sm:$0xff]  ;;  %v792_v19 = vld [vmem:[%s1617_s2 + $0x190] sm:$0xff]  ;;  %v972_v20 = vpack.c.bf16 %v797_v12, %v793_v11  ;;  %v799_v22 = vld [vmem:[%s1617_s2 + $0x1c8] sm:$0xff] }
  0x14   :  { %945 = vmatprep.subr.bf16.mxu1 %v944_v58  ;;  %v796_v21 = vld [vmem:[%s1617_s2 + $0x1b0] sm:$0xff]  ;;  %v803_v23 = vld [vmem:[%s1617_s2 + $0x1e8] sm:$0xff]  ;;  %v801_v24 = vld [vmem:[%s1617_s2 + $0x1d8] sm:$0xff]  ;;  %v954_v26 = vpack.c.bf16 %v794_v18, %v790_v17 }
  0x15   :  { %v805_v25 = vld [vmem:[%s1617_s2 + $0x1f8] sm:$0xff]  ;;  %v974_v27 = vpack.c.bf16 %v796_v21, %v792_v19  ;;  %v956_v28 = vpack.c.bf16 %v803_v23, %v799_v22  ;;  %v798_v29 = vld [vmem:[%s1617_s2 + $0x1c0] sm:$0xff]  ;;  %v800_v31 = vld [vmem:[%s1617_s2 + $0x1d0] sm:$0xff] }
  0x16   :  { %927 = vmatpush1.bf16.msra.mxu0 %v926_v0  ;;  %v802_v30 = vld [vmem:[%s1617_s2 + $0x1e0] sm:$0xff]  ;;  %v976_v32 = vpack.c.bf16 %v805_v25, %v801_v24  ;;  %v804_v33 = vld [vmem:[%s1617_s2 + $0x1f0] sm:$0xff]  ;;  %v807_v34 = vld [vmem:[%s1617_s2 + $0x208] sm:$0xff] }
  0x17   :  { %947 = vmatpush1.bf16.msra.mxu1 %v946_v1  ;;  %949 = vmatprep.subr.bf16.mxu0 %v948_v2  ;;  %v811_v35 = vld [vmem:[%s1617_s2 + $0x228] sm:$0xff]  ;;  %v809_v36 = vld [vmem:[%s1617_s2 + $0x218] sm:$0xff]  ;;  %v958_v38 = vpack.c.bf16 %v802_v30, %v798_v29  ;;  %v978_v39 = vpack.c.bf16 %v804_v33, %v800_v31  ;;  %v806_v41 = vld [vmem:[%s1617_s2 + $0x200] sm:$0xff] }
  0x18   :  { %969 = vmatprep.subr.bf16.mxu1 %v968_v7  ;;  %v813_v37 = vld [vmem:[%s1617_s2 + $0x238] sm:$0xff]  ;;  %v960_v40 = vpack.c.bf16 %v811_v35, %v807_v34  ;;  %v810_v42 = vld [vmem:[%s1617_s2 + $0x220] sm:$0xff]  ;;  %v808_v43 = vld [vmem:[%s1617_s2 + $0x210] sm:$0xff] }
  0x19   :  { %780 = vmatmul.mubr.msk.f32.vlgmr.msra.gmra.mrb[0].mxu0 %vm61_vm0, %v1254_v13  ;;  %v980_v44 = vpack.c.bf16 %v813_v37, %v809_v36  ;;  %v812_v45 = vld [vmem:[%s1617_s2 + $0x230] sm:$0xff]  ;;  %v815_v46 = vld [vmem:[%s1617_s2 + $0x248] sm:$0xff]  ;;  %v817_v48 = vld [vmem:[%s1617_s2 + $0x258] sm:$0xff]  ;;  %v962_v50 = vpack.c.bf16 %v810_v42, %v806_v41 }
  0x1a   :  { %781 = vmatmul.mubr.msk.f32.vlgmr.msra.gmra.mrb[0].mxu1 %vm61_vm0, %v1254_v13  ;;  %951 = vmatpush1.bf16.msra.mxu0 %v950_v14  ;;  %v819_v47 = vld [vmem:[%s1617_s2 + $0x268] sm:$0xff]  ;;  %v821_v49 = vld [vmem:[%s1617_s2 + $0x278] sm:$0xff]  ;;  %v982_v51 = vpack.c.bf16 %v812_v45, %v808_v43  ;;  %v814_v53 = vld [vmem:[%s1617_s2 + $0x240] sm:$0xff] }
  0x1b   :  { %971 = vmatpush1.bf16.msra.mxu1 %v970_v15  ;;  %953 = vmatprep.subr.bf16.mxu0 %v952_v16  ;;  %v964_v52 = vpack.c.bf16 %v819_v47, %v815_v46  ;;  %v818_v54 = vld [vmem:[%s1617_s2 + $0x260] sm:$0xff]  ;;  %v816_v55 = vld [vmem:[%s1617_s2 + $0x250] sm:$0xff]  ;;  %v984_v56 = vpack.c.bf16 %v821_v49, %v817_v48  ;;  %v825_v58 = vld [vmem:[%s1617_s2 + $0x288] sm:$0xff] }
  0x1c   :  { %973 = vmatprep.subr.bf16.mxu1 %v972_v20  ;;  %312 = vmatprep.mubr.f32.mxu0 %v1071_v3  ;;  %v820_v57 = vld [vmem:[%s1617_s2 + $0x270] sm:$0xff]  ;;  %v829_v59 = vld [vmem:[%s1617_s2 + $0x2a8] sm:$0xff]  ;;  %v827_v60 = vld [vmem:[%s1617_s2 + $0x298] sm:$0xff]  ;;  %v966_v62 = vpack.c.bf16 %v818_v54, %v814_v53 }
  0x1d   :  { %383 = vmatprep.mubr.f32.mxu1 %v1071_v3  ;;  %v831_v61 = vld [vmem:[%s1617_s2 + $0x2b8] sm:$0xff]  ;;  %v986_v63 = vpack.c.bf16 %v820_v57, %v816_v55  ;;  %v988_v0 = vpack.c.bf16 %v829_v59, %v825_v58  ;;  %v824_v1 = vld [vmem:[%s1617_s2 + $0x280] sm:$0xff]  ;;  %v826_v4 = vld [vmem:[%s1617_s2 + $0x290] sm:$0xff] }
  0x1e   :  { %955 = vmatpush1.bf16.msra.mxu0 %v954_v26  ;;  %v828_v2 = vld [vmem:[%s1617_s2 + $0x2a0] sm:$0xff]  ;;  %v1008_v5 = vpack.c.bf16 %v831_v61, %v827_v60  ;;  %v830_v6 = vld [vmem:[%s1617_s2 + $0x2b0] sm:$0xff]  ;;  %v833_v7 = vld [vmem:[%s1617_s2 + $0x2c8] sm:$0xff] }
  0x1f   :  { %975 = vmatpush1.bf16.msra.mxu1 %v974_v27  ;;  %957 = vmatprep.subr.bf16.mxu0 %v956_v28  ;;  %v837_v8 = vld [vmem:[%s1617_s2 + $0x2e8] sm:$0xff]  ;;  %v835_v9 = vld [vmem:[%s1617_s2 + $0x2d8] sm:$0xff]  ;;  %v990_v11 = vpack.c.bf16 %v828_v2, %v824_v1  ;;  %v1010_v12 = vpack.c.bf16 %v830_v6, %v826_v4  ;;  %v832_v15 = vld [vmem:[%s1617_s2 + $0x2c0] sm:$0xff] }
  0x20   :  { %977 = vmatprep.subr.bf16.mxu1 %v976_v32  ;;  %v839_v10 = vld [vmem:[%s1617_s2 + $0x2f8] sm:$0xff]  ;;  %v992_v14 = vpack.c.bf16 %v837_v8, %v833_v7  ;;  %v836_v16 = vld [vmem:[%s1617_s2 + $0x2e0] sm:$0xff]  ;;  %v834_v17 = vld [vmem:[%s1617_s2 + $0x2d0] sm:$0xff] }
  0x21   :  { %v1012_v18 = vpack.c.bf16 %v839_v10, %v835_v9  ;;  %v838_v19 = vld [vmem:[%s1617_s2 + $0x2f0] sm:$0xff]  ;;  %v841_v20 = vld [vmem:[%s1617_s2 + $0x308] sm:$0xff]  ;;  %v843_v22 = vld [vmem:[%s1617_s2 + $0x318] sm:$0xff]  ;;  %v994_v24 = vpack.c.bf16 %v836_v16, %v832_v15 }
  0x22   :  { %959 = vmatpush1.bf16.msra.mxu0 %v958_v38  ;;  %v845_v21 = vld [vmem:[%s1617_s2 + $0x328] sm:$0xff]  ;;  %v847_v23 = vld [vmem:[%s1617_s2 + $0x338] sm:$0xff]  ;;  %v1014_v25 = vpack.c.bf16 %v838_v19, %v834_v17  ;;  %v840_v27 = vld [vmem:[%s1617_s2 + $0x300] sm:$0xff] }
  0x23   :  { %979 = vmatpush1.bf16.msra.mxu1 %v978_v39  ;;  %961 = vmatprep.subr.bf16.mxu0 %v960_v40  ;;  %v996_v26 = vpack.c.bf16 %v845_v21, %v841_v20  ;;  %v844_v28 = vld [vmem:[%s1617_s2 + $0x320] sm:$0xff]  ;;  %v842_v29 = vld [vmem:[%s1617_s2 + $0x310] sm:$0xff]  ;;  %v1016_v30 = vpack.c.bf16 %v847_v23, %v843_v22  ;;  %v849_v32 = vld [vmem:[%s1617_s2 + $0x348] sm:$0xff] }
  0x24   :  { %981 = vmatprep.subr.bf16.mxu1 %v980_v44  ;;  %v846_v31 = vld [vmem:[%s1617_s2 + $0x330] sm:$0xff]  ;;  %v853_v33 = vld [vmem:[%s1617_s2 + $0x368] sm:$0xff]  ;;  %v851_v34 = vld [vmem:[%s1617_s2 + $0x358] sm:$0xff]  ;;  %v998_v36 = vpack.c.bf16 %v844_v28, %v840_v27 }
  0x25   :  { %v855_v35 = vld [vmem:[%s1617_s2 + $0x378] sm:$0xff]  ;;  %v1018_v37 = vpack.c.bf16 %v846_v31, %v842_v29  ;;  %v1000_v38 = vpack.c.bf16 %v853_v33, %v849_v32  ;;  %v848_v39 = vld [vmem:[%s1617_s2 + $0x340] sm:$0xff]  ;;  %v850_v41 = vld [vmem:[%s1617_s2 + $0x350] sm:$0xff] }
  0x26   :  { %963 = vmatpush1.bf16.msra.mxu0 %v962_v50  ;;  %v852_v40 = vld [vmem:[%s1617_s2 + $0x360] sm:$0xff]  ;;  %v1020_v42 = vpack.c.bf16 %v855_v35, %v851_v34  ;;  %v854_v43 = vld [vmem:[%s1617_s2 + $0x370] sm:$0xff]  ;;  %v857_v44 = vld [vmem:[%s1617_s2 + $0x388] sm:$0xff] }
  0x27   :  { %983 = vmatpush1.bf16.msra.mxu1 %v982_v51  ;;  %965 = vmatprep.subr.bf16.mxu0 %v964_v52  ;;  %v861_v45 = vld [vmem:[%s1617_s2 + $0x3a8] sm:$0xff]  ;;  %v859_v46 = vld [vmem:[%s1617_s2 + $0x398] sm:$0xff]  ;;  %v1002_v48 = vpack.c.bf16 %v852_v40, %v848_v39  ;;  %v856_v49 = vld [vmem:[%s1617_s2 + $0x380] sm:$0xff]  ;;  %v1022_v50 = vpack.c.bf16 %v854_v43, %v850_v41 }
  0x28   :  { %985 = vmatprep.subr.bf16.mxu1 %v984_v56  ;;  %v863_v47 = vld [vmem:[%s1617_s2 + $0x3b8] sm:$0xff]  ;;  %v1004_v51 = vpack.c.bf16 %v861_v45, %v857_v44  ;;  %v860_v52 = vld [vmem:[%s1617_s2 + $0x3a0] sm:$0xff]  ;;  %v858_v53 = vld [vmem:[%s1617_s2 + $0x390] sm:$0xff] }
  0x29   :  { %v15_v54 = vld [vmem:[%s1619_s1] sm:$0xff]  ;;  %v1024_v55 = vpack.c.bf16 %v863_v47, %v859_v46  ;;  %v862_v56 = vld [vmem:[%s1617_s2 + $0x3b0] sm:$0xff]  ;;  %v867_v57 = vld [vmem:[%s1617_s2 + $0x3c8] sm:$0xff]  ;;  %v1006_v61 = vpack.c.bf16 %v860_v52, %v856_v49 }
  0x2a   :  { %967 = vmatpush1.bf16.msra.mxu0 %v966_v62  ;;  %v871_v58 = vld [vmem:[%s1617_s2 + $0x3e8] sm:$0xff]  ;;  %58 = vperm.xlu0 %1070, %v15_v54   ;;  %v869_v59 = vld [vmem:[%s1617_s2 + $0x3d8] sm:$0xff]  ;;  %v1026_v62 = vpack.c.bf16 %v862_v56, %v858_v53  ;;  %v870_v1 = vld [vmem:[%s1617_s2 + $0x3e0] sm:$0xff] }
  0x2b   :  { %987 = vmatpush1.bf16.msra.mxu1 %v986_v63  ;;  %989 = vmatprep.subr.bf16.mxu0 %v988_v0  ;;  %v873_v60 = vld [vmem:[%s1617_s2 + $0x3f8] sm:$0xff]  ;;  %v1028_v63 = vpack.c.bf16 %v871_v58, %v867_v57  ;;  %v866_v0 = vld [vmem:[%s1617_s2 + $0x3c0] sm:$0xff]  ;;  %v868_v2 = vld [vmem:[%s1617_s2 + $0x3d0] sm:$0xff] }
  0x2c   :  { %1009 = vmatprep.subr.bf16.mxu1 %v1008_v5  ;;  %v1048_v4 = vpack.c.bf16 %v873_v60, %v869_v59  ;;  %v872_v5 = vld [vmem:[%s1617_s2 + $0x3f0] sm:$0xff]  ;;  %v875_v6 = vld [vmem:[%s1617_s2 + $0x408] sm:$0xff]  ;;  %v877_v8 = vld [vmem:[%s1617_s2 + $0x418] sm:$0xff]  ;;  %v1030_v10 = vpack.c.bf16 %v870_v1, %v866_v0 }
  0x2d   :  { %822 = vmatmul.mubr.msk.f32.vlgmr.msra.gmra.mrb[2].mxu0 %vm61_vm0, %v1254_v13  ;;  %v879_v7 = vld [vmem:[%s1617_s2 + $0x428] sm:$0xff]  ;;  %v881_v9 = vld [vmem:[%s1617_s2 + $0x438] sm:$0xff]  ;;  %v878_v15 = vld [vmem:[%s1617_s2 + $0x420] sm:$0xff] }
  0x2e   :  { %823 = vmatmul.mubr.msk.f32.vlgmr.msra.gmra.mrb[2].mxu1 %vm61_vm0, %v1254_v13  ;;  %991 = vmatpush1.bf16.msra.mxu0 %v990_v11  ;;  %v1050_v11 = vpack.c.bf16 %v872_v5, %v868_v2  ;;  %v876_v16 = vld [vmem:[%s1617_s2 + $0x410] sm:$0xff]  ;;  %v1052_v17 = vpack.c.bf16 %v881_v9, %v877_v8  ;;  %v883_v19 = vld [vmem:[%s1617_s2 + $0x448] sm:$0xff]  ;;  %v885_v21 = vld [vmem:[%s1617_s2 + $0x458] sm:$0xff] }
  0x2f   :  { %1011 = vmatpush1.bf16.msra.mxu1 %v1010_v12  ;;  %993 = vmatprep.subr.bf16.mxu0 %v992_v14  ;;  %v1032_v12 = vpack.c.bf16 %v879_v7, %v875_v6  ;;  %v874_v14 = vld [vmem:[%s1617_s2 + $0x400] sm:$0xff]  ;;  %v887_v20 = vld [vmem:[%s1617_s2 + $0x468] sm:$0xff]  ;;  %v889_v22 = vld [vmem:[%s1617_s2 + $0x478] sm:$0xff] }
  0x30   :  { %1013 = vmatprep.subr.bf16.mxu1 %v1012_v18  ;;  %499 = vmatprep.mubr.f32.mxu0 %v1071_v3  ;;  %v880_v18 = vld [vmem:[%s1617_s2 + $0x430] sm:$0xff]  ;;  %v1034_v23 = vpack.c.bf16 %v878_v15, %v874_v14  ;;  %v886_v27 = vld [vmem:[%s1617_s2 + $0x460] sm:$0xff]  ;;  %v1056_v29 = vpack.c.bf16 %v889_v22, %v885_v21  ;;  %v891_v31 = vld [vmem:[%s1617_s2 + $0x488] sm:$0xff] }
  0x31   :  { %570 = vmatprep.mubr.f32.mxu1 %v1071_v3  ;;  %v884_v28 = vld [vmem:[%s1617_s2 + $0x450] sm:$0xff]  ;;  %v895_v32 = vld [vmem:[%s1617_s2 + $0x4a8] sm:$0xff]  ;;  %v893_v33 = vld [vmem:[%s1617_s2 + $0x498] sm:$0xff] }
  0x32   :  { %995 = vmatpush1.bf16.msra.mxu0 %v994_v24  ;;  %v1054_v24 = vpack.c.bf16 %v880_v18, %v876_v16  ;;  %v897_v34 = vld [vmem:[%s1617_s2 + $0x4b8] sm:$0xff]  ;;  %v894_v39 = vld [vmem:[%s1617_s2 + $0x4a0] sm:$0xff]  ;;  %v892_v40 = vld [vmem:[%s1617_s2 + $0x490] sm:$0xff] }
  0x33   :  { %1015 = vmatpush1.bf16.msra.mxu1 %v1014_v25  ;;  %997 = vmatprep.subr.bf16.mxu0 %v996_v26  ;;  %v1036_v25 = vpack.c.bf16 %v887_v20, %v883_v19  ;;  %v882_v26 = vld [vmem:[%s1617_s2 + $0x440] sm:$0xff]  ;;  %v896_v41 = vld [vmem:[%s1617_s2 + $0x4b0] sm:$0xff]  ;;  %v903_v43 = vld [vmem:[%s1617_s2 + $0x4e8] sm:$0xff] }
  0x34   :  { %1017 = vmatprep.subr.bf16.mxu1 %v1016_v30  ;;  %v888_v30 = vld [vmem:[%s1617_s2 + $0x470] sm:$0xff]  ;;  %v1038_v35 = vpack.c.bf16 %v886_v27, %v882_v26  ;;  %v901_v44 = vld [vmem:[%s1617_s2 + $0x4d8] sm:$0xff]  ;;  %v1062_v47 = vpack.c.bf16 %v896_v41, %v892_v40  ;;  %v898_v49 = vld [vmem:[%s1617_s2 + $0x4c0] sm:$0xff] }
  0x35   :  { %v905_v45 = vld [vmem:[%s1617_s2 + $0x4f8] sm:$0xff]  ;;  %v900_v52 = vld [vmem:[%s1617_s2 + $0x4d0] sm:$0xff] }
  0x36   :  { %999 = vmatpush1.bf16.msra.mxu0 %v998_v36  ;;  %v1058_v36 = vpack.c.bf16 %v888_v30, %v884_v28  ;;  %v904_v53 = vld [vmem:[%s1617_s2 + $0x4f0] sm:$0xff] }
  0x37   :  { %1019 = vmatpush1.bf16.msra.mxu1 %v1018_v37  ;;  %1001 = vmatprep.subr.bf16.mxu0 %v1000_v38  ;;  %v1040_v37 = vpack.c.bf16 %v895_v32, %v891_v31  ;;  %v890_v38 = vld [vmem:[%s1617_s2 + $0x480] sm:$0xff] }
  0x38   :  { %1021 = vmatprep.subr.bf16.mxu1 %v1020_v42  ;;  %v899_v42 = vld [vmem:[%s1617_s2 + $0x4c8] sm:$0xff]  ;;  %v1042_v46 = vpack.c.bf16 %v894_v39, %v890_v38 }
  0x3a   :  { %1003 = vmatpush1.bf16.msra.mxu0 %v1002_v48  ;;  %v1044_v48 = vpack.c.bf16 %v903_v43, %v899_v42 }
  0x3b   :  { %1023 = vmatpush1.bf16.msra.mxu1 %v1022_v50  ;;  %1005 = vmatprep.subr.bf16.mxu0 %v1004_v51  ;;  %v902_v50 = vld [vmem:[%s1617_s2 + $0x4e0] sm:$0xff]  ;;  %v1064_v51 = vpack.c.bf16 %v905_v45, %v901_v44 }
  0x3c   :  { %1025 = vmatprep.subr.bf16.mxu1 %v1024_v55  ;;  %v1046_v54 = vpack.c.bf16 %v902_v50, %v898_v49  ;;  %v1066_v55 = vpack.c.bf16 %v904_v53, %v900_v52 }
  0x3e   :  { %1007 = vmatpush1.bf16.msra.mxu0 %v1006_v61 }
  0x3f   :  { %1027 = vmatpush1.bf16.msra.mxu1 %v1026_v62  ;;  %1029 = vmatprep.subr.bf16.mxu0 %v1028_v63 }
  0x40   :  { %1049 = vmatprep.subr.bf16.mxu1 %v1048_v4 }
  0x41   :  { %864 = vmatmul.mubr.msk.f32.vlgmr.msra.gmra.mrb[4].mxu0 %vm61_vm0, %v1254_v13 }
  0x42   :  { %865 = vmatmul.mubr.msk.f32.vlgmr.msra.gmra.mrb[4].mxu1 %vm61_vm0, %v1254_v13  ;;  %1031 = vmatpush1.bf16.msra.mxu0 %v1030_v10 }
  0x43   :  { %1051 = vmatpush1.bf16.msra.mxu1 %v1050_v11  ;;  %1033 = vmatprep.subr.bf16.mxu0 %v1032_v12 }
  0x44   :  { %1053 = vmatprep.subr.bf16.mxu1 %v1052_v17  ;;  %686 = vmatprep.mubr.f32.mxu0 %v1071_v3 }
  0x45   :  { %757 = vmatprep.mubr.f32.mxu1 %v1071_v3  ;;  %v1060_v3 = vpack.c.bf16 %v897_v34, %v893_v33 }
  0x46   :  { %1035 = vmatpush1.bf16.msra.mxu0 %v1034_v23 }
  0x47   :  { %1055 = vmatpush1.bf16.msra.mxu1 %v1054_v24  ;;  %1037 = vmatprep.subr.bf16.mxu0 %v1036_v25 }
  0x48   :  { %1057 = vmatprep.subr.bf16.mxu1 %v1056_v29 }
  0x4a   :  { %1039 = vmatpush1.bf16.msra.mxu0 %v1038_v35 }
  0x4b   :  { %1059 = vmatpush1.bf16.msra.mxu1 %v1058_v36  ;;  %1041 = vmatprep.subr.bf16.mxu0 %v1040_v37 }
  0x4c   :  { %1061 = vmatprep.subr.bf16.mxu1 %v1060_v3 }
  0x4e   :  { %1043 = vmatpush1.bf16.msra.mxu0 %v1042_v46 }
  0x4f   :  { %1063 = vmatpush1.bf16.msra.mxu1 %v1062_v47  ;;  %1045 = vmatprep.subr.bf16.mxu0 %v1044_v48 }
  0x50   :  { %1065 = vmatprep.subr.bf16.mxu1 %v1064_v51 }
  0x52   :  { %1047 = vmatpush1.bf16.msra.mxu0 %v1046_v54 }
  0x53   :  { %1067 = vmatpush1.bf16.msra.mxu1 %v1066_v55 }
  0x55   :  { %906 = vmatmul.mubr.msk.f32.vlgmr.msra.gmra.mrb[6].mxu0 %vm61_vm0, %v1254_v13 }
  0x56   :  { %907 = vmatmul.mubr.msk.f32.vlgmr.msra.gmra.mrb[6].mxu1 %vm61_vm0, %v1254_v13 }
  0xa9   :  { %v59_v60 = vpop.permute.xlu0 %58 }
  0xec   :  { %v131_v56 = vpop.f32.mrb[0].mxu0 }
  0xed   :  { %v202_v57 = vpop.f32.mrb[0].mxu1  ;;  %v133_v58 = vpop.f32.mrb[1].mxu0  ;;  %v132_v62 = vadd.f32 %v131_v56, %v59_v60 }
  0xee   :  { %v204_v59 = vpop.f32.mrb[1].mxu1  ;;  %v134_v2 = vadd.f32 %v133_v58, %v59_v60  ;;  %v203_v4 = vadd.f32 %v202_v57, %v59_v60 }
  0xef   :  { %v205_v8 = vadd.f32 %v204_v59, %v59_v60 }
 0x100   :  { %v314_v61 = vpop.f32.mrb[2].mxu0 }
 0x101   :  { %v315_v63 = vadd.f32 %v314_v61, %v59_v60  ;;  %v385_v0 = vpop.f32.mrb[2].mxu1  ;;  %v316_v1 = vpop.f32.mrb[3].mxu0 }
 0x102   :  { %v386_v5 = vadd.f32 %v385_v0, %v59_v60  ;;  %v317_v6 = vadd.f32 %v316_v1, %v59_v60  ;;  %v387_v7 = vpop.f32.mrb[3].mxu1 }
 0x103   :  { %v390_v9 = vmax.f32 %v132_v62, %v315_v63  ;;  %v388_v10 = vadd.f32 %v387_v7, %v59_v60 }
 0x104   :  { %v392_v11 = vmax.f32 %v203_v4, %v386_v5  ;;  %v391_v13 = vmax.f32 %v134_v2, %v317_v6 }
 0x105   :  { %v393_v12 = vmax.f32 %v205_v8, %v388_v10 }
 0x114   :  { %v501_v14 = vpop.f32.mrb[4].mxu0 }
 0x115   :  { %v502_v15 = vadd.f32 %v501_v14, %v59_v60  ;;  %v572_v16 = vpop.f32.mrb[4].mxu1  ;;  %v503_v17 = vpop.f32.mrb[5].mxu0 }
 0x116   :  { %v573_v18 = vadd.f32 %v572_v16, %v59_v60  ;;  %v504_v19 = vadd.f32 %v503_v17, %v59_v60  ;;  %v574_v20 = vpop.f32.mrb[5].mxu1 }
 0x117   :  { %v577_v21 = vmax.f32 %v390_v9, %v502_v15  ;;  %v575_v22 = vadd.f32 %v574_v20, %v59_v60 }
 0x118   :  { %v579_v23 = vmax.f32 %v392_v11, %v573_v18  ;;  %v578_v24 = vmax.f32 %v391_v13, %v504_v19 }
 0x119   :  { %v580_v25 = vmax.f32 %v393_v12, %v575_v22 }
 0x128   :  { %v688_v26 = vpop.f32.mrb[6].mxu0 }
 0x129   :  { %v689_v27 = vadd.f32 %v688_v26, %v59_v60  ;;  %v759_v28 = vpop.f32.mrb[6].mxu1  ;;  %v690_v29 = vpop.f32.mrb[7].mxu0 }
 0x12a   :  { %v760_v30 = vadd.f32 %v759_v28, %v59_v60  ;;  %v691_v31 = vadd.f32 %v690_v29, %v59_v60  ;;  %v761_v32 = vpop.f32.mrb[7].mxu1 }
 0x12b   :  { %v764_v33 = vmax.f32 %v577_v21, %v689_v27  ;;  %v762_v34 = vadd.f32 %v761_v32, %v59_v60 }
 0x12c   :  { %v766_v35 = vmax.f32 %v579_v23, %v760_v30  ;;  %v765_v36 = vmax.f32 %v578_v24, %v691_v31 }
 0x12d   :  { %v768_v37 = vmax.f32 %v764_v33, 0.0  ;;  %v767_v38 = vmax.f32 %v580_v25, %v762_v34 }
 0x12e   :  { %v770_v39 = vmax.f32 %v766_v35, 0.0  ;;  %v769_v40 = vmax.f32 %v765_v36, 0.0 }
 0x12f   :  { %772 = vst [vmem:[%s1620_s3] sm:$0xff] %v768_v37  ;;  %v771_v3 = vmax.f32 %v767_v38, 0.0 }
 0x130   :  { %774 = vst [vmem:[%s1620_s3 + $0x10] sm:$0xff] %v770_v39  ;;  %773 = vst [vmem:[%s1620_s3 + $0x8] sm:$0xff] %v769_v40 }
 0x131   :  { %775 = vst [vmem:[%s1620_s3 + $0x18] sm:$0xff] %v771_v3 }

// kernel: net_forward.4
= control target key start
LH: loop header
LB: loop body
LE: loop exit
PB: predicated region body
PF: predicated region fallthrough
CT: control target
= control target key end

     0   :  { %v607_v0 = vmov 0.0|0.0   ;;  %v608_v8 = vmov 0   ;;  %vm49_vm0 = vcmask 195584   ;;  %v609_v61 = vmov 0.0   ;;  %s954_s2 = inlined_call_operand.vmem [shape: f32[4,152,128], index: 2, kind: input, shape index: {}]   ;;  %s955_s0 = inlined_call_operand.vmem [shape: f32[16,152], index: 0, kind: input, shape index: {}]   ;;  %s956_s1 = inlined_call_operand.vmem [shape: f32[16,1], index: 1, kind: input, shape index: {}]   ;;  %s957_s3 = inlined_call_operand.vmem [shape: f32[16,128], index: 3, kind: output, shape index: {}]  }
   0x1   :  { %495 = vmatprep.subr.bf16.mxu0 %v607_v0  ;;  %522 = vmatprep.subr.bf16.mxu1 %v607_v0  ;;  %v20_v1 = vld [vmem:[%s954_s2] sm:$0xff]  ;;  %v21_v2 = vld [vmem:[%s954_s2 + $0x8] sm:$0xff]  ;;  %v432_v3 = vld [vmem:[%s954_s2 + $0x98] sm:$0xff] }
   0x2   :  { %v496_v4 = vpack.c.bf16 %v21_v2, %v20_v1  ;;  %v433_v5 = vld [vmem:[%s954_s2 + $0xa0] sm:$0xff]  ;;  %v22_v6 = vld [vmem:[%s954_s2 + $0x10] sm:$0xff]  ;;  %v23_v7 = vld [vmem:[%s954_s2 + $0x18] sm:$0xff]  ;;  %606 = vset.pattern.permute.xlu0 %v608_v8 }
   0x3   :  { %v523_v9 = vpack.c.bf16 %v433_v5, %v432_v3  ;;  %v434_v10 = vld [vmem:[%s954_s2 + $0xa8] sm:$0xff]  ;;  %v435_v11 = vld [vmem:[%s954_s2 + $0xb0] sm:$0xff]  ;;  %v499_v12 = vpack.c.bf16 %v23_v7, %v22_v6  ;;  %v24_v14 = vld [vmem:[%s954_s2 + $0x20] sm:$0xff] }
   0x4   :  { %497 = vmatpush1.bf16.msra.mxu0 %v496_v4  ;;  %v526_v13 = vpack.c.bf16 %v435_v11, %v434_v10  ;;  %v25_v15 = vld [vmem:[%s954_s2 + $0x28] sm:$0xff]  ;;  %v436_v16 = vld [vmem:[%s954_s2 + $0xb8] sm:$0xff]  ;;  %v437_v17 = vld [vmem:[%s954_s2 + $0xc0] sm:$0xff] }
   0x5   :  { %524 = vmatpush1.bf16.msra.mxu1 %v523_v9  ;;  %498 = vmatprep.subr.bf16.mxu0 %v607_v0  ;;  %v502_v18 = vpack.c.bf16 %v25_v15, %v24_v14  ;;  %v529_v19 = vpack.c.bf16 %v437_v17, %v436_v16  ;;  %v26_v20 = vld [vmem:[%s954_s2 + $0x30] sm:$0xff]  ;;  %v27_v21 = vld [vmem:[%s954_s2 + $0x38] sm:$0xff]  ;;  %v438_v22 = vld [vmem:[%s954_s2 + $0xc8] sm:$0xff] }
   0x6   :  { %525 = vmatprep.subr.bf16.mxu1 %v607_v0  ;;  %v439_v23 = vld [vmem:[%s954_s2 + $0xd0] sm:$0xff]  ;;  %v505_v24 = vpack.c.bf16 %v27_v21, %v26_v20  ;;  %v28_v26 = vld [vmem:[%s954_s2 + $0x40] sm:$0xff]  ;;  %v29_v27 = vld [vmem:[%s954_s2 + $0x48] sm:$0xff] }
   0x7   :  { %v532_v25 = vpack.c.bf16 %v439_v23, %v438_v22  ;;  %v694_v28 = vld [vmem:[%s955_s0 + $0x8] sm:$0xff]  ;;  %v440_v29 = vld [vmem:[%s954_s2 + $0xd8] sm:$0xff]  ;;  %v441_v30 = vld [vmem:[%s954_s2 + $0xe0] sm:$0xff]  ;;  %v508_v31 = vpack.c.bf16 %v29_v27, %v28_v26 }
   0x8   :  { %500 = vmatpush1.bf16.msra.mxu0 %v499_v12  ;;  %430 = vmatprep.mubr.msk.f32.mxu0 %vm49_vm0, %v694_v28  ;;  %v535_v32 = vpack.c.bf16 %v441_v30, %v440_v29  ;;  %v30_v33 = vld [vmem:[%s954_s2 + $0x50] sm:$0xff]  ;;  %v31_v34 = vld [vmem:[%s954_s2 + $0x58] sm:$0xff]  ;;  %v442_v35 = vld [vmem:[%s954_s2 + $0xe8] sm:$0xff] }
   0x9   :  { %527 = vmatpush1.bf16.msra.mxu1 %v526_v13  ;;  %501 = vmatprep.subr.bf16.mxu0 %v607_v0  ;;  %v443_v36 = vld [vmem:[%s954_s2 + $0xf0] sm:$0xff]  ;;  %v511_v37 = vpack.c.bf16 %v31_v34, %v30_v33  ;;  %v32_v39 = vld [vmem:[%s954_s2 + $0x60] sm:$0xff]  ;;  %v33_v40 = vld [vmem:[%s954_s2 + $0x68] sm:$0xff] }
   0xa   :  { %528 = vmatprep.subr.bf16.mxu1 %v607_v0  ;;  %451 = vmatprep.mubr.msk.f32.mxu1 %vm49_vm0, %v694_v28  ;;  %v538_v38 = vpack.c.bf16 %v443_v36, %v442_v35  ;;  %v444_v41 = vld [vmem:[%s954_s2 + $0xf8] sm:$0xff]  ;;  %v445_v42 = vld [vmem:[%s954_s2 + $0x100] sm:$0xff]  ;;  %v514_v43 = vpack.c.bf16 %v33_v40, %v32_v39  ;;  %v34_v45 = vld [vmem:[%s954_s2 + $0x70] sm:$0xff] }
   0xb   :  { %v541_v44 = vpack.c.bf16 %v445_v42, %v444_v41  ;;  %v35_v46 = vld [vmem:[%s954_s2 + $0x78] sm:$0xff]  ;;  %v446_v47 = vld [vmem:[%s954_s2 + $0x108] sm:$0xff]  ;;  %v447_v48 = vld [vmem:[%s954_s2 + $0x110] sm:$0xff] }
   0xc   :  { %503 = vmatpush1.bf16.msra.mxu0 %v502_v18  ;;  %v18_v49 = vld [vmem:[%s956_s1] sm:$0xff]  ;;  %v517_v50 = vpack.c.bf16 %v35_v46, %v34_v45  ;;  %v544_v51 = vpack.c.bf16 %v447_v48, %v446_v47  ;;  %v37_v53 = vld [vmem:[%s954_s2 + $0x88] sm:$0xff]  ;;  %v448_v55 = vld [vmem:[%s954_s2 + $0x118] sm:$0xff] }
   0xd   :  { %530 = vmatpush1.bf16.msra.mxu1 %v529_v19  ;;  %504 = vmatprep.subr.bf16.mxu0 %v607_v0  ;;  %v36_v52 = vld [vmem:[%s954_s2 + $0x80] sm:$0xff]  ;;  %v19_v54 = vld [vmem:[%s956_s1 + $0x8] sm:$0xff]  ;;  %v453_v59 = vld [vmem:[%s954_s2 + $0x130] sm:$0xff] }
   0xe   :  { %531 = vmatprep.subr.bf16.mxu1 %v607_v0  ;;  %41 = vperm.xlu0 %606, %v18_v49   ;;  %v449_v56 = vld [vmem:[%s954_s2 + $0x120] sm:$0xff]  ;;  %v520_v57 = vpack.c.bf16 %v37_v53, %v36_v52  ;;  %v454_v60 = vld [vmem:[%s954_s2 + $0x138] sm:$0xff]  ;;  %v38_v62 = vld [vmem:[%s954_s2 + $0x90] sm:$0xff] }
   0xf   :  { %v547_v58 = vpack.c.bf16 %v449_v56, %v448_v55  ;;  %v474_v63 = vld [vmem:[%s954_s2 + $0x1c8] sm:$0xff]  ;;  %v475_v1 = vld [vmem:[%s954_s2 + $0x1d0] sm:$0xff]  ;;  %v794_v3 = vld [vmem:[%s955_s0] sm:$0xff]  ;;  %v550_v4 = vpack.c.bf16 %v454_v60, %v453_v59 }
  0x10   :  { %506 = vmatpush1.bf16.msra.mxu0 %v505_v24  ;;  %v450_v2 = vld [vmem:[%s954_s2 + $0x128] sm:$0xff]  ;;  %v577_v5 = vpack.c.bf16 %v475_v1, %v474_v63  ;;  %v455_v6 = vld [vmem:[%s954_s2 + $0x140] sm:$0xff]  ;;  %v476_v8 = vld [vmem:[%s954_s2 + $0x1d8] sm:$0xff] }
  0x11   :  { %533 = vmatpush1.bf16.msra.mxu1 %v532_v25  ;;  %507 = vmatprep.subr.bf16.mxu0 %v607_v0  ;;  %v456_v7 = vld [vmem:[%s954_s2 + $0x148] sm:$0xff]  ;;  %v477_v9 = vld [vmem:[%s954_s2 + $0x1e0] sm:$0xff]  ;;  %v814_v10 = vld [vmem:[%s955_s0 + $0x18] sm:$0xff] }
  0x12   :  { %534 = vmatprep.subr.bf16.mxu1 %v607_v0  ;;  %46 = vperm.xlu0 %606, %v19_v54   ;;  %v553_v11 = vpack.c.bf16 %v456_v7, %v455_v6  ;;  %v820_v12 = vld [vmem:[%s955_s0 + $0x10] sm:$0xff]  ;;  %v580_v13 = vpack.c.bf16 %v477_v9, %v476_v8  ;;  %v458_v15 = vld [vmem:[%s954_s2 + $0x158] sm:$0xff]  ;;  %v478_v16 = vld [vmem:[%s954_s2 + $0x1e8] sm:$0xff] }
  0x13   :  { %v457_v14 = vld [vmem:[%s954_s2 + $0x150] sm:$0xff]  ;;  %v459_v20 = vld [vmem:[%s954_s2 + $0x160] sm:$0xff]  ;;  %v460_v21 = vld [vmem:[%s954_s2 + $0x168] sm:$0xff] }
  0x14   :  { %509 = vmatpush1.bf16.msra.mxu0 %v508_v31  ;;  %v479_v17 = vld [vmem:[%s954_s2 + $0x1f0] sm:$0xff]  ;;  %v556_v18 = vpack.c.bf16 %v458_v15, %v457_v14  ;;  %v480_v22 = vld [vmem:[%s954_s2 + $0x1f8] sm:$0xff]  ;;  %v481_v23 = vld [vmem:[%s954_s2 + $0x200] sm:$0xff]  ;;  %v559_v24 = vpack.c.bf16 %v460_v21, %v459_v20 }
  0x15   :  { %536 = vmatpush1.bf16.msra.mxu1 %v535_v32  ;;  %510 = vmatprep.subr.bf16.mxu0 %v607_v0  ;;  %v583_v19 = vpack.c.bf16 %v479_v17, %v478_v16  ;;  %v586_v25 = vpack.c.bf16 %v481_v23, %v480_v22  ;;  %v461_v26 = vld [vmem:[%s954_s2 + $0x170] sm:$0xff]  ;;  %v462_v27 = vld [vmem:[%s954_s2 + $0x178] sm:$0xff]  ;;  %v463_v32 = vld [vmem:[%s954_s2 + $0x180] sm:$0xff] }
  0x16   :  { %537 = vmatprep.subr.bf16.mxu1 %v607_v0  ;;  %v483_v29 = vld [vmem:[%s954_s2 + $0x210] sm:$0xff]  ;;  %v562_v30 = vpack.c.bf16 %v462_v27, %v461_v26  ;;  %v464_v33 = vld [vmem:[%s954_s2 + $0x188] sm:$0xff]  ;;  %v484_v34 = vld [vmem:[%s954_s2 + $0x218] sm:$0xff] }
  0x17   :  { %v485_v35 = vld [vmem:[%s954_s2 + $0x220] sm:$0xff]  ;;  %v565_v36 = vpack.c.bf16 %v464_v33, %v463_v32  ;;  %v466_v39 = vld [vmem:[%s954_s2 + $0x198] sm:$0xff]  ;;  %v486_v40 = vld [vmem:[%s954_s2 + $0x228] sm:$0xff] }
  0x18   :  { %512 = vmatpush1.bf16.msra.mxu0 %v511_v37  ;;  %v592_v37 = vpack.c.bf16 %v485_v35, %v484_v34  ;;  %v487_v41 = vld [vmem:[%s954_s2 + $0x230] sm:$0xff]  ;;  %v468_v45 = vld [vmem:[%s954_s2 + $0x1a8] sm:$0xff]  ;;  %v488_v46 = vld [vmem:[%s954_s2 + $0x238] sm:$0xff] }
  0x19   :  { %539 = vmatpush1.bf16.msra.mxu1 %v538_v38  ;;  %513 = vmatprep.subr.bf16.mxu0 %v607_v0  ;;  %v465_v38 = vld [vmem:[%s954_s2 + $0x190] sm:$0xff]  ;;  %v489_v47 = vld [vmem:[%s954_s2 + $0x240] sm:$0xff]  ;;  %v490_v52 = vld [vmem:[%s954_s2 + $0x248] sm:$0xff] }
  0x1a   :  { %540 = vmatprep.subr.bf16.mxu1 %v607_v0  ;;  %v568_v42 = vpack.c.bf16 %v466_v39, %v465_v38  ;;  %v598_v49 = vpack.c.bf16 %v489_v47, %v488_v46  ;;  %v491_v53 = vld [vmem:[%s954_s2 + $0x250] sm:$0xff]  ;;  %v471_v56 = vld [vmem:[%s954_s2 + $0x1c0] sm:$0xff] }
  0x1b   :  { %v601_v55 = vpack.c.bf16 %v491_v53, %v490_v52 }
  0x1c   :  { %515 = vmatpush1.bf16.msra.mxu0 %v514_v43  ;;  %v595_v43 = vpack.c.bf16 %v487_v41, %v486_v40 }
  0x1d   :  { %542 = vmatpush1.bf16.msra.mxu1 %v541_v44  ;;  %516 = vmatprep.subr.bf16.mxu0 %v607_v0  ;;  %v467_v44 = vld [vmem:[%s954_s2 + $0x1a0] sm:$0xff] }
  0x1e   :  { %543 = vmatprep.subr.bf16.mxu1 %v607_v0  ;;  %v571_v48 = vpack.c.bf16 %v468_v45, %v467_v44 }
  0x20   :  { %518 = vmatpush1.bf16.msra.mxu0 %v517_v50  ;;  %v469_v50 = vld [vmem:[%s954_s2 + $0x1b0] sm:$0xff] }
  0x21   :  { %545 = vmatpush1.bf16.msra.mxu1 %v544_v51  ;;  %519 = vmatprep.subr.bf16.mxu0 %v607_v0  ;;  %v470_v51 = vld [vmem:[%s954_s2 + $0x1b8] sm:$0xff] }
  0x22   :  { %546 = vmatprep.subr.bf16.mxu1 %v607_v0  ;;  %v574_v54 = vpack.c.bf16 %v470_v51, %v469_v50 }
  0x24   :  { %521 = vmatpush1.bf16.msra.mxu0 %v520_v57  ;;  %v492_v57 = vld [vmem:[%s954_s2 + $0x258] sm:$0xff] }
  0x25   :  { %548 = vmatpush1.bf16.msra.mxu1 %v547_v58  ;;  %92 = vmatprep.subr.mxu0 %v609_v61 }
  0x26   :  { %187 = vmatprep.subr.mxu1 %v609_v61 }
  0x28   :  { %93 = vmatpush1.msra.mxu0 %v38_v62 }
  0x29   :  { %188 = vmatpush1.msra.mxu1 %v450_v2  ;;  %121 = vmatmul.mubr.f32.vlgmr.msra.gmra.mrb[0].mxu0 %v794_v3 }
  0x2a   :  { %549 = vmatprep.subr.bf16.mxu0 %v607_v0  ;;  %576 = vmatprep.subr.bf16.mxu1 %v607_v0 }
  0x2b   :  { %216 = vmatmul.mubr.f32.vlgmr.msra.gmra.mrb[0].mxu1 %v794_v3  ;;  %551 = vmatpush1.bf16.msra.mxu0 %v550_v4 }
  0x2c   :  { %578 = vmatpush1.bf16.msra.mxu1 %v577_v5  ;;  %552 = vmatprep.subr.bf16.mxu0 %v607_v0 }
  0x2d   :  { %579 = vmatprep.subr.bf16.mxu1 %v607_v0  ;;  %431 = vmatprep.mubr.msk.f32.mxu0 %vm49_vm0, %v814_v10 }
  0x2e   :  { %126 = vmatmul.mubr.f32.gmra.mrb[2].mxu0 %v820_v12  ;;  %452 = vmatprep.mubr.msk.f32.mxu1 %vm49_vm0, %v814_v10 }
  0x2f   :  { %554 = vmatpush1.bf16.msra.mxu0 %v553_v11  ;;  %221 = vmatmul.mubr.f32.gmra.mrb[2].mxu1 %v820_v12 }
  0x30   :  { %581 = vmatpush1.bf16.msra.mxu1 %v580_v13  ;;  %555 = vmatprep.subr.bf16.mxu0 %v607_v0 }
  0x31   :  { %582 = vmatprep.subr.bf16.mxu1 %v607_v0  ;;  %472 = vmatprep.mubr.msk.f32.mxu0 %vm49_vm0, %v694_v28 }
  0x32   :  { %493 = vmatprep.mubr.msk.f32.mxu1 %vm49_vm0, %v694_v28  ;;  %v482_v28 = vld [vmem:[%s954_s2 + $0x208] sm:$0xff] }
  0x33   :  { %557 = vmatpush1.bf16.msra.mxu0 %v556_v18  ;;  %v589_v31 = vpack.c.bf16 %v483_v29, %v482_v28 }
  0x34   :  { %584 = vmatpush1.bf16.msra.mxu1 %v583_v19  ;;  %558 = vmatprep.subr.bf16.mxu0 %v607_v0 }
  0x35   :  { %585 = vmatprep.subr.bf16.mxu1 %v607_v0 }
  0x37   :  { %560 = vmatpush1.bf16.msra.mxu0 %v559_v24 }
  0x38   :  { %587 = vmatpush1.bf16.msra.mxu1 %v586_v25  ;;  %561 = vmatprep.subr.bf16.mxu0 %v607_v0 }
  0x39   :  { %588 = vmatprep.subr.bf16.mxu1 %v607_v0 }
  0x3b   :  { %563 = vmatpush1.bf16.msra.mxu0 %v562_v30 }
  0x3c   :  { %590 = vmatpush1.bf16.msra.mxu1 %v589_v31  ;;  %564 = vmatprep.subr.bf16.mxu0 %v607_v0 }
  0x3d   :  { %591 = vmatprep.subr.bf16.mxu1 %v607_v0 }
  0x3f   :  { %566 = vmatpush1.bf16.msra.mxu0 %v565_v36 }
  0x40   :  { %593 = vmatpush1.bf16.msra.mxu1 %v592_v37  ;;  %567 = vmatprep.subr.bf16.mxu0 %v607_v0 }
  0x41   :  { %594 = vmatprep.subr.bf16.mxu1 %v607_v0 }
  0x43   :  { %569 = vmatpush1.bf16.msra.mxu0 %v568_v42 }
  0x44   :  { %596 = vmatpush1.bf16.msra.mxu1 %v595_v43  ;;  %570 = vmatprep.subr.bf16.mxu0 %v607_v0 }
  0x45   :  { %597 = vmatprep.subr.bf16.mxu1 %v607_v0 }
  0x47   :  { %572 = vmatpush1.bf16.msra.mxu0 %v571_v48 }
  0x48   :  { %599 = vmatpush1.bf16.msra.mxu1 %v598_v49  ;;  %573 = vmatprep.subr.bf16.mxu0 %v607_v0 }
  0x49   :  { %600 = vmatprep.subr.bf16.mxu1 %v607_v0 }
  0x4b   :  { %575 = vmatpush1.bf16.msra.mxu0 %v574_v54 }
  0x4c   :  { %602 = vmatpush1.bf16.msra.mxu1 %v601_v55  ;;  %284 = vmatprep.subr.mxu0 %v609_v61 }
  0x4d   :  { %381 = vmatprep.subr.mxu1 %v609_v61 }
  0x4f   :  { %285 = vmatpush1.msra.mxu0 %v471_v56 }
  0x50   :  { %382 = vmatpush1.msra.mxu1 %v492_v57  ;;  %313 = vmatmul.mubr.f32.vlgmr.msra.gmra.mrb[4].mxu0 %v794_v3 }
  0x51   :  { %410 = vmatmul.mubr.f32.vlgmr.msra.gmra.mrb[4].mxu1 %v794_v3  ;;  %473 = vmatprep.mubr.msk.f32.mxu0 %vm49_vm0, %v814_v10 }
  0x52   :  { %494 = vmatprep.mubr.msk.f32.mxu1 %vm49_vm0, %v814_v10 }
  0x54   :  { %318 = vmatmul.mubr.f32.gmra.mrb[6].mxu0 %v820_v12 }
  0x55   :  { %415 = vmatmul.mubr.f32.gmra.mrb[6].mxu1 %v820_v12 }
  0x8d   :  { %v42_v0 = vpop.permute.xlu0 %41 }
  0x91   :  { %v47_v1 = vpop.permute.xlu0 %46 }
  0xfc   :  { %v122_v58 = vpop.f32.mrb[0].mxu0 }
  0xfd   :  { %v124_v59 = vpop.f32.mrb[1].mxu0  ;;  %v123_v60 = vadd.f32 %v122_v58, %v42_v0 }
  0xfe   :  { %v217_v61 = vpop.f32.mrb[0].mxu1 }
  0xff   :  { %v218_v62 = vadd.f32 %v217_v61, %v42_v0  ;;  %v219_v63 = vpop.f32.mrb[1].mxu1 }
 0x101   :  { %v226_v2 = vmax.f32 %v123_v60, %v218_v62  ;;  %v127_v3 = vpop.f32.mrb[2].mxu0 }
 0x102   :  { %v128_v4 = vadd.f32 %v127_v3, %v47_v1  ;;  %v129_v5 = vpop.f32.mrb[3].mxu0  ;;  %v222_v6 = vpop.f32.mrb[2].mxu1 }
 0x103   :  { %v223_v7 = vadd.f32 %v222_v6, %v47_v1  ;;  %v224_v8 = vpop.f32.mrb[3].mxu1 }
 0x105   :  { %v227_v9 = vmax.f32 %v128_v4, %v223_v7 }
 0x123   :  { %v314_v10 = vpop.f32.mrb[4].mxu0 }
 0x124   :  { %v315_v11 = vadd.f32 %v314_v10, %v42_v0  ;;  %v411_v13 = vpop.f32.mrb[4].mxu1  ;;  %v316_v12 = vpop.f32.mrb[5].mxu0 }
 0x125   :  { %v413_v14 = vpop.f32.mrb[5].mxu1  ;;  %v412_v16 = vadd.f32 %v411_v13, %v42_v0 }
 0x126   :  { %v323_v15 = vmax.f32 %v226_v2, %v315_v11 }
 0x127   :  { %v319_v17 = vpop.f32.mrb[6].mxu0 }
 0x128   :  { %v420_v18 = vmax.f32 %v323_v15, %v412_v16  ;;  %v320_v19 = vadd.f32 %v319_v17, %v47_v1  ;;  %v416_v20 = vpop.f32.mrb[6].mxu1  ;;  %v321_v21 = vpop.f32.mrb[7].mxu0 }
 0x129   :  { %v418_v22 = vpop.f32.mrb[7].mxu1  ;;  %v417_v25 = vadd.f32 %v416_v20, %v47_v1 }
 0x12a   :  { %v422_v23 = vmax.f32 %v420_v18, 0.0  ;;  %v324_v24 = vmax.f32 %v227_v9, %v320_v19 }
 0x12c   :  { %424 = vst [vmem:[%s957_s3] sm:$0xff] %v422_v23  ;;  %v421_v26 = vmax.f32 %v324_v24, %v417_v25 }
 0x12e   :  { %v423_v27 = vmax.f32 %v421_v26, 0.0 }
 0x130   :  { %425 = vst [vmem:[%s957_s3 + $0x8] sm:$0xff] %v423_v27 }

// kernel: net_forward.5
= control target key start
LH: loop header
LB: loop body
LE: loop exit
PB: predicated region body
PF: predicated region fallthrough
CT: control target
= control target key end

     0   :  { %vm727_vm0 = vmmov 0   ;;  %s1097_s1 = inlined_call_operand.vmem [shape: f32[512,128], index: 1, kind: input, shape index: {}]   ;;  %s1098_s0 = inlined_call_operand.vmem [shape: f32[8,512], index: 0, kind: input, shape index: {}]   ;;  %s1099_s3 = inlined_call_operand.vmem [shape: f32[128,128], index: 3, kind: input, shape index: {}]   ;;  %s1100_s5 = inlined_call_operand.vmem [shape: f32[128,128], index: 5, kind: input, shape index: {}]   ;;  %s1101_s2 = inlined_call_operand.vmem [shape: f32[1,128], index: 2, kind: input, shape index: {}]   ;;  %s1102_s4 = inlined_call_operand.vmem [shape: f32[1,128], index: 4, kind: input, shape index: {}]   ;;  %s1103_s6 = inlined_call_operand.vmem [shape: f32[1,128], index: 6, kind: input, shape index: {}]   ;;  %s1104_s7 = inlined_call_operand.vmem [shape: f32[8,128], index: 7, kind: output, shape index: {}]  }
   0x1   :  { %v46_v0 = vld [vmem:[%s1097_s1 + $0x80] sm:$0xff]  ;;  %v47_v1 = vld [vmem:[%s1097_s1 + $0x88] sm:$0xff]  ;;  %v48_v11 = vld [vmem:[%s1097_s1 + $0x90] sm:$0xff] }
   0x2   :  { %v30_v2 = vld [vmem:[%s1097_s1] sm:$0xff]  ;;  %v611_v3 = vpack.c.bf16 %v47_v1, %v46_v0  ;;  %v31_v4 = vld [vmem:[%s1097_s1 + $0x8] sm:$0xff]  ;;  %v49_v13 = vld [vmem:[%s1097_s1 + $0x98] sm:$0xff] }
   0x3   :  { %v78_v5 = vld [vmem:[%s1097_s1 + $0x180] sm:$0xff]  ;;  %v79_v6 = vld [vmem:[%s1097_s1 + $0x188] sm:$0xff]  ;;  %v613_v7 = vpack.c.bf16 %v31_v4, %v30_v2  ;;  %v32_v14 = vld [vmem:[%s1097_s1 + $0x10] sm:$0xff]  ;;  %v615_v16 = vpack.c.bf16 %v49_v13, %v48_v11 }
   0x4   :  { %v643_v8 = vpack.c.bf16 %v79_v6, %v78_v5  ;;  %v62_v9 = vld [vmem:[%s1097_s1 + $0x100] sm:$0xff]  ;;  %v63_v10 = vld [vmem:[%s1097_s1 + $0x108] sm:$0xff]  ;;  %612 = vmatprep.subr.bf16.mxu0 %v611_v3  ;;  %v33_v15 = vld [vmem:[%s1097_s1 + $0x18] sm:$0xff] }
   0x5   :  { %v645_v12 = vpack.c.bf16 %v63_v10, %v62_v9  ;;  %614 = vmatpush3.bf16.msra.mxu0 %v613_v7  ;;  %v617_v17 = vpack.c.bf16 %v33_v15, %v32_v14  ;;  %v80_v18 = vld [vmem:[%s1097_s1 + $0x190] sm:$0xff]  ;;  %v81_v19 = vld [vmem:[%s1097_s1 + $0x198] sm:$0xff]  ;;  %v50_v23 = vld [vmem:[%s1097_s1 + $0xa0] sm:$0xff] }
   0x6   :  { %644 = vmatprep.subr.bf16.mxu1 %v643_v8  ;;  %v64_v20 = vld [vmem:[%s1097_s1 + $0x110] sm:$0xff]  ;;  %v647_v21 = vpack.c.bf16 %v81_v19, %v80_v18  ;;  %v65_v22 = vld [vmem:[%s1097_s1 + $0x118] sm:$0xff]  ;;  %v51_v24 = vld [vmem:[%s1097_s1 + $0xa8] sm:$0xff]  ;;  %616 = vmatprep.subr.bf16.mxu0 %v615_v16 }
   0x7   :  { %646 = vmatpush3.bf16.msra.mxu1 %v645_v12  ;;  %v649_v25 = vpack.c.bf16 %v65_v22, %v64_v20  ;;  %v619_v26 = vpack.c.bf16 %v51_v24, %v50_v23  ;;  %v34_v27 = vld [vmem:[%s1097_s1 + $0x20] sm:$0xff]  ;;  %v35_v28 = vld [vmem:[%s1097_s1 + $0x28] sm:$0xff]  ;;  %v52_v35 = vld [vmem:[%s1097_s1 + $0xb0] sm:$0xff] }
   0x8   :  { %v82_v29 = vld [vmem:[%s1097_s1 + $0x1a0] sm:$0xff]  ;;  %648 = vmatprep.subr.bf16.mxu1 %v647_v21  ;;  %v83_v30 = vld [vmem:[%s1097_s1 + $0x1a8] sm:$0xff]  ;;  %v621_v33 = vpack.c.bf16 %v35_v28, %v34_v27  ;;  %v53_v36 = vld [vmem:[%s1097_s1 + $0xb8] sm:$0xff] }
   0x9   :  { %v66_v31 = vld [vmem:[%s1097_s1 + $0x120] sm:$0xff]  ;;  %v67_v32 = vld [vmem:[%s1097_s1 + $0x128] sm:$0xff]  ;;  %618 = vmatpush3.bf16.msra.mxu0 %v617_v17  ;;  %v651_v34 = vpack.c.bf16 %v83_v30, %v82_v29  ;;  %v36_v37 = vld [vmem:[%s1097_s1 + $0x30] sm:$0xff]  ;;  %v623_v39 = vpack.c.bf16 %v53_v36, %v52_v35 }
   0xa   :  { %620 = vmatprep.subr.bf16.mxu0 %v619_v26  ;;  %v653_v38 = vpack.c.bf16 %v67_v32, %v66_v31  ;;  %v37_v40 = vld [vmem:[%s1097_s1 + $0x38] sm:$0xff]  ;;  %v84_v41 = vld [vmem:[%s1097_s1 + $0x1b0] sm:$0xff]  ;;  %v54_v46 = vld [vmem:[%s1097_s1 + $0xc0] sm:$0xff] }
   0xb   :  { %650 = vmatpush3.bf16.msra.mxu1 %v649_v25  ;;  %v85_v42 = vld [vmem:[%s1097_s1 + $0x1b8] sm:$0xff]  ;;  %v68_v44 = vld [vmem:[%s1097_s1 + $0x130] sm:$0xff]  ;;  %v55_v47 = vld [vmem:[%s1097_s1 + $0xc8] sm:$0xff]  ;;  %v625_v48 = vpack.c.bf16 %v37_v40, %v36_v37 }
   0xc   :  { %652 = vmatprep.subr.bf16.mxu1 %v651_v34  ;;  %v655_v43 = vpack.c.bf16 %v85_v42, %v84_v41  ;;  %v69_v45 = vld [vmem:[%s1097_s1 + $0x138] sm:$0xff]  ;;  %v86_v49 = vld [vmem:[%s1097_s1 + $0x1c0] sm:$0xff]  ;;  %v87_v50 = vld [vmem:[%s1097_s1 + $0x1c8] sm:$0xff]  ;;  %v627_v52 = vpack.c.bf16 %v55_v47, %v54_v46 }
   0xd   :  { %622 = vmatpush3.bf16.msra.mxu0 %v621_v33  ;;  %v657_v51 = vpack.c.bf16 %v69_v45, %v68_v44  ;;  %v38_v53 = vld [vmem:[%s1097_s1 + $0x40] sm:$0xff]  ;;  %v39_v54 = vld [vmem:[%s1097_s1 + $0x48] sm:$0xff]  ;;  %v659_v56 = vpack.c.bf16 %v87_v50, %v86_v49  ;;  %v56_v58 = vld [vmem:[%s1097_s1 + $0xd0] sm:$0xff] }
   0xe   :  { %624 = vmatprep.subr.bf16.mxu0 %v623_v39  ;;  %v70_v55 = vld [vmem:[%s1097_s1 + $0x140] sm:$0xff]  ;;  %v71_v57 = vld [vmem:[%s1097_s1 + $0x148] sm:$0xff]  ;;  %v57_v59 = vld [vmem:[%s1097_s1 + $0xd8] sm:$0xff]  ;;  %v629_v62 = vpack.c.bf16 %v39_v54, %v38_v53  ;;  %v726_v39 = vmov 0.0|0.0  }
   0xf   :  { %654 = vmatpush3.bf16.msra.mxu1 %v653_v38  ;;  %v88_v60 = vld [vmem:[%s1097_s1 + $0x1d0] sm:$0xff]  ;;  %v89_v61 = vld [vmem:[%s1097_s1 + $0x1d8] sm:$0xff]  ;;  %v661_v63 = vpack.c.bf16 %v71_v57, %v70_v55  ;;  %v631_v0 = vpack.c.bf16 %v57_v59, %v56_v58  ;;  %v58_v6 = vld [vmem:[%s1097_s1 + $0xe0] sm:$0xff] }
  0x10   :  { %656 = vmatprep.subr.bf16.mxu1 %v655_v43  ;;  %v40_v1 = vld [vmem:[%s1097_s1 + $0x50] sm:$0xff]  ;;  %v41_v2 = vld [vmem:[%s1097_s1 + $0x58] sm:$0xff]  ;;  %v663_v4 = vpack.c.bf16 %v89_v61, %v88_v60  ;;  %v59_v7 = vld [vmem:[%s1097_s1 + $0xe8] sm:$0xff]  ;;  %v728_v61 = vmov 0.0  }
  0x11   :  { %626 = vmatpush3.bf16.msra.mxu0 %v625_v48  ;;  %v72_v3 = vld [vmem:[%s1097_s1 + $0x150] sm:$0xff]  ;;  %v73_v5 = vld [vmem:[%s1097_s1 + $0x158] sm:$0xff]  ;;  %v90_v8 = vld [vmem:[%s1097_s1 + $0x1e0] sm:$0xff]  ;;  %v633_v10 = vpack.c.bf16 %v41_v2, %v40_v1  ;;  %v635_v14 = vpack.c.bf16 %v59_v7, %v58_v6 }
  0x12   :  { %628 = vmatprep.subr.bf16.mxu0 %v627_v52  ;;  %v91_v9 = vld [vmem:[%s1097_s1 + $0x1e8] sm:$0xff]  ;;  %v42_v11 = vld [vmem:[%s1097_s1 + $0x60] sm:$0xff]  ;;  %v665_v13 = vpack.c.bf16 %v73_v5, %v72_v3  ;;  %v60_v19 = vld [vmem:[%s1097_s1 + $0xf0] sm:$0xff] }
  0x13   :  { %658 = vmatpush3.bf16.msra.mxu1 %v657_v51  ;;  %v43_v12 = vld [vmem:[%s1097_s1 + $0x68] sm:$0xff]  ;;  %v74_v15 = vld [vmem:[%s1097_s1 + $0x160] sm:$0xff]  ;;  %v667_v18 = vpack.c.bf16 %v91_v9, %v90_v8  ;;  %v61_v20 = vld [vmem:[%s1097_s1 + $0xf8] sm:$0xff] }
  0x14   :  { %660 = vmatprep.subr.bf16.mxu1 %v659_v56  ;;  %v75_v16 = vld [vmem:[%s1097_s1 + $0x168] sm:$0xff]  ;;  %v29_v21 = vld [vmem:[%s1098_s0 + $0x18] sm:$0xff]  ;;  %v92_v22 = vld [vmem:[%s1097_s1 + $0x1f0] sm:$0xff]  ;;  %v637_v24 = vpack.c.bf16 %v43_v12, %v42_v11  ;;  %v639_v26 = vpack.c.bf16 %v61_v20, %v60_v19 }
  0x15   :  { %630 = vmatpush3.bf16.msra.mxu0 %v629_v62  ;;  %v27_v17 = vld [vmem:[%s1098_s0 + $0x8] sm:$0xff]  ;;  %v93_v23 = vld [vmem:[%s1097_s1 + $0x1f8] sm:$0xff]  ;;  %235 = vmatprep.mubr.f32.mxu1 %v29_v21  ;;  %v669_v25 = vpack.c.bf16 %v75_v16, %v74_v15  ;;  %v44_v27 = vld [vmem:[%s1097_s1 + $0x70] sm:$0xff] }
  0x16   :  { %632 = vmatprep.subr.bf16.mxu0 %v631_v0  ;;  %165 = vmatprep.mubr.f32.mxu0 %v27_v17  ;;  %v45_v28 = vld [vmem:[%s1097_s1 + $0x78] sm:$0xff]  ;;  %v671_v29 = vpack.c.bf16 %v93_v23, %v92_v22  ;;  %v76_v30 = vld [vmem:[%s1097_s1 + $0x170] sm:$0xff]  ;;  %v242_v34 = vld [vmem:[%s1099_s3] sm:$0xff] }
  0x17   :  { %662 = vmatpush3.bf16.msra.mxu1 %v661_v63  ;;  %v77_v31 = vld [vmem:[%s1097_s1 + $0x178] sm:$0xff]  ;;  %v641_v32 = vpack.c.bf16 %v45_v28, %v44_v27  ;;  %v243_v35 = vld [vmem:[%s1099_s3 + $0x8] sm:$0xff]  ;;  %v26_v36 = vld [vmem:[%s1098_s0] sm:$0xff] }
  0x18   :  { %664 = vmatprep.subr.bf16.mxu1 %v663_v4  ;;  %v673_v33 = vpack.c.bf16 %v77_v31, %v76_v30  ;;  %v676_v37 = vpack.c.bf16 %v243_v35, %v242_v34  ;;  %v28_v38 = vld [vmem:[%s1098_s0 + $0x10] sm:$0xff]  ;;  %v245_v41 = vld [vmem:[%s1099_s3 + $0x18] sm:$0xff]  ;;  %v246_v43 = vld [vmem:[%s1099_s3 + $0x20] sm:$0xff] }
  0x19   :  { %634 = vmatpush3.bf16.msra.mxu0 %v633_v10  ;;  %v244_v40 = vld [vmem:[%s1099_s3 + $0x10] sm:$0xff]  ;;  %v247_v44 = vld [vmem:[%s1099_s3 + $0x28] sm:$0xff]  ;;  %v249_v47 = vld [vmem:[%s1099_s3 + $0x38] sm:$0xff] }
  0x1a   :  { %636 = vmatprep.subr.bf16.mxu0 %v635_v14  ;;  %v679_v42 = vpack.c.bf16 %v245_v41, %v244_v40  ;;  %v682_v45 = vpack.c.bf16 %v247_v44, %v246_v43  ;;  %v248_v46 = vld [vmem:[%s1099_s3 + $0x30] sm:$0xff]  ;;  %v250_v49 = vld [vmem:[%s1099_s3 + $0x40] sm:$0xff]  ;;  %v251_v50 = vld [vmem:[%s1099_s3 + $0x48] sm:$0xff] }
  0x1b   :  { %666 = vmatpush3.bf16.msra.mxu1 %v665_v13  ;;  %v685_v48 = vpack.c.bf16 %v249_v47, %v248_v46  ;;  %v688_v51 = vpack.c.bf16 %v251_v50, %v250_v49  ;;  %v252_v52 = vld [vmem:[%s1099_s3 + $0x50] sm:$0xff]  ;;  %v253_v53 = vld [vmem:[%s1099_s3 + $0x58] sm:$0xff]  ;;  %v254_v55 = vld [vmem:[%s1099_s3 + $0x60] sm:$0xff] }
  0x1c   :  { %668 = vmatprep.subr.bf16.mxu1 %v667_v18  ;;  %v691_v54 = vpack.c.bf16 %v253_v53, %v252_v52  ;;  %v255_v56 = vld [vmem:[%s1099_s3 + $0x68] sm:$0xff]  ;;  %v256_v58 = vld [vmem:[%s1099_s3 + $0x70] sm:$0xff]  ;;  %v257_v59 = vld [vmem:[%s1099_s3 + $0x78] sm:$0xff] }
  0x1d   :  { %638 = vmatpush3.bf16.msra.mxu0 %v637_v24  ;;  %v694_v57 = vpack.c.bf16 %v255_v56, %v254_v55  ;;  %v697_v60 = vpack.c.bf16 %v257_v59, %v256_v58  ;;  %v336_v62 = vld [vmem:[%s1100_s5] sm:$0xff]  ;;  %v337_v63 = vld [vmem:[%s1100_s5 + $0x8] sm:$0xff]  ;;  %v338_v0 = vld [vmem:[%s1100_s5 + $0x10] sm:$0xff] }
  0x1e   :  { %640 = vmatprep.subr.bf16.mxu0 %v639_v26  ;;  %v700_v1 = vpack.c.bf16 %v337_v63, %v336_v62  ;;  %v339_v2 = vld [vmem:[%s1100_s5 + $0x18] sm:$0xff]  ;;  %v340_v4 = vld [vmem:[%s1100_s5 + $0x20] sm:$0xff]  ;;  %v341_v5 = vld [vmem:[%s1100_s5 + $0x28] sm:$0xff] }
  0x1f   :  { %670 = vmatpush3.bf16.msra.mxu1 %v669_v25  ;;  %v703_v3 = vpack.c.bf16 %v339_v2, %v338_v0  ;;  %v706_v6 = vpack.c.bf16 %v341_v5, %v340_v4  ;;  %v342_v7 = vld [vmem:[%s1100_s5 + $0x30] sm:$0xff]  ;;  %v343_v8 = vld [vmem:[%s1100_s5 + $0x38] sm:$0xff]  ;;  %v344_v10 = vld [vmem:[%s1100_s5 + $0x40] sm:$0xff] }
  0x20   :  { %672 = vmatprep.subr.bf16.mxu1 %v671_v29  ;;  %v709_v9 = vpack.c.bf16 %v343_v8, %v342_v7  ;;  %v345_v11 = vld [vmem:[%s1100_s5 + $0x48] sm:$0xff]  ;;  %v346_v13 = vld [vmem:[%s1100_s5 + $0x50] sm:$0xff]  ;;  %v347_v14 = vld [vmem:[%s1100_s5 + $0x58] sm:$0xff] }
  0x21   :  { %642 = vmatpush3.bf16.msra.mxu0 %v641_v32  ;;  %v712_v12 = vpack.c.bf16 %v345_v11, %v344_v10  ;;  %v715_v15 = vpack.c.bf16 %v347_v14, %v346_v13  ;;  %v348_v16 = vld [vmem:[%s1100_s5 + $0x60] sm:$0xff]  ;;  %v349_v17 = vld [vmem:[%s1100_s5 + $0x68] sm:$0xff]  ;;  %v350_v29 = vld [vmem:[%s1100_s5 + $0x70] sm:$0xff] }
  0x22   :  { %675 = vmatprep.subr.bf16.mxu0 %v726_v39  ;;  %v718_v18 = vpack.c.bf16 %v349_v17, %v348_v16  ;;  %v434_v20 = vld [vmem:[%s1101_s2] ss:$0 sm:$0xff]  ;;  %v351_v30 = vld [vmem:[%s1100_s5 + $0x78] sm:$0xff] }
  0x23   :  { %674 = vmatpush3.bf16.msra.mxu1 %v673_v33  ;;  %v721_v31 = vpack.c.bf16 %v351_v30, %v350_v29  ;;  %v435_v32 = vld [vmem:[%s1102_s4] ss:$0 sm:$0xff] }
  0x24   :  { %699 = vmatprep.subr.bf16.mxu1 %v726_v39  ;;  %166 = vmatmul.mubr.f32.vlgmr.msra.gmra.mrb[0].mxu0 %v26_v36 }
  0x25   :  { %677 = vmatpush3.bf16.msra.mxu0 %v676_v37  ;;  %573 = vmatprep.mubr.msk.f32.mxu0 %vm727_vm0, %v728_v61  ;;  %v436_v37 = vld [vmem:[%s1103_s6] ss:$0 sm:$0xff] }
  0x26   :  { %236 = vmatmul.mubr.f32.vlgmr.msra.gmra.mrb[0].mxu1 %v28_v38  ;;  %678 = vmatprep.subr.bf16.mxu0 %v726_v39 }
  0x27   :  { %608 = vmatprep.mubr.msk.f32.mxu1 %vm727_vm0, %v728_v61  ;;  %701 = vmatpush3.bf16.msra.mxu1 %v700_v1 }
  0x28   :  { %702 = vmatprep.subr.bf16.mxu1 %v726_v39 }
  0x29   :  { %680 = vmatpush3.bf16.msra.mxu0 %v679_v42 }
  0x2a   :  { %681 = vmatprep.subr.bf16.mxu0 %v726_v39 }
  0x2b   :  { %704 = vmatpush3.bf16.msra.mxu1 %v703_v3 }
  0x2c   :  { %705 = vmatprep.subr.bf16.mxu1 %v726_v39 }
  0x2d   :  { %683 = vmatpush3.bf16.msra.mxu0 %v682_v45 }
  0x2e   :  { %684 = vmatprep.subr.bf16.mxu0 %v726_v39 }
  0x2f   :  { %707 = vmatpush3.bf16.msra.mxu1 %v706_v6 }
  0x30   :  { %708 = vmatprep.subr.bf16.mxu1 %v726_v39 }
  0x31   :  { %686 = vmatpush3.bf16.msra.mxu0 %v685_v48 }
  0x32   :  { %687 = vmatprep.subr.bf16.mxu0 %v726_v39 }
  0x33   :  { %710 = vmatpush3.bf16.msra.mxu1 %v709_v9 }
  0x34   :  { %711 = vmatprep.subr.bf16.mxu1 %v726_v39 }
  0x35   :  { %689 = vmatpush3.bf16.msra.mxu0 %v688_v51 }
  0x36   :  { %690 = vmatprep.subr.bf16.mxu0 %v726_v39 }
  0x37   :  { %713 = vmatpush3.bf16.msra.mxu1 %v712_v12 }
  0x38   :  { %714 = vmatprep.subr.bf16.mxu1 %v726_v39 }
  0x39   :  { %692 = vmatpush3.bf16.msra.mxu0 %v691_v54 }
  0x3a   :  { %693 = vmatprep.subr.bf16.mxu0 %v726_v39 }
  0x3b   :  { %716 = vmatpush3.bf16.msra.mxu1 %v715_v15 }
  0x3c   :  { %717 = vmatprep.subr.bf16.mxu1 %v726_v39 }
  0x3d   :  { %695 = vmatpush3.bf16.msra.mxu0 %v694_v57 }
  0x3e   :  { %696 = vmatprep.subr.bf16.mxu0 %v726_v39 }
  0x3f   :  { %719 = vmatpush3.bf16.msra.mxu1 %v718_v18 }
  0x40   :  { %720 = vmatprep.subr.bf16.mxu1 %v726_v39 }
  0x41   :  { %698 = vmatpush3.bf16.msra.mxu0 %v697_v60 }
  0x43   :  { %722 = vmatpush3.bf16.msra.mxu1 %v721_v31 }
  0xf7   :  { %v469_v19 = vpop.f32.mrb[0].mxu0 }
  0xf8   :  { %v470_v21 = vpop.f32.mrb[1].mxu0 }
  0xf9   :  { %v504_v22 = vpop.f32.mrb[0].mxu1  ;;  %v471_v23 = vadd.f32 %v470_v21, %v469_v19 }
  0xfa   :  { %v505_v24 = vpop.f32.mrb[1].mxu1 }
  0xfb   :  { %v506_v25 = vadd.f32 %v505_v24, %v504_v22  ;;  %v168_v26 = vadd.f32 %v471_v23, %v434_v20 }
  0xfd   :  { %v238_v27 = vadd.f32 %v506_v25, %v168_v26 }
  0xff   :  { %v241_v28 = vmax.f32 %v238_v27, 0.0 }
 0x101   :  { %574 = vmatmul.mubr.f32.vlgmr.msra.gmra.mrb[2].mxu0 %v241_v28 }
 0x1d4   :  { %v331_v33 = vpop.f32.mrb[2].mxu0 }
 0x1d5   :  { %v332_v34 = vadd.f32 %v435_v32, %v331_v33  ;;  %v575_v35 = vpop.f32.mrb[3].mxu0 }
 0x1d7   :  { %v335_v36 = vmax.f32 %v332_v34, 0.0 }
 0x1d9   :  { %609 = vmatmul.mubr.f32.vlgmr.msra.gmra.mrb[2].mxu1 %v335_v36 }
 0x2ac   :  { %v425_v38 = vpop.f32.mrb[2].mxu1 }
 0x2ad   :  { %v426_v39 = vadd.f32 %v436_v37, %v425_v38  ;;  %v610_v40 = vpop.f32.mrb[3].mxu1 }
 0x2af   :  { %429 = vst [vmem:[%s1104_s7] sm:$0xff] %v426_v39 }

</bundles_post_ra>
